<compile_context>
chip_gen: v7x
topology: tpu7x:2x2x1
jax: 0.10.0
libtpu: 0.0.40
codegen_flags: <defaults>
</compile_context>

<pallas_src>
import numpy as np

import jax
import jax.numpy as jnp
from jax import lax
from jax.experimental import pallas as pl
from jax.experimental.pallas import tpu as pltpu


# Fixed architecture geometry (input must be 1x14x14 so the flatten is 16*2*2).
_IN_H = _IN_W = 14
_IN_FLAT = _IN_H * _IN_W            # 196
_C1_COLS = 1024                     # 4 pool1 slots * 256 (6x6 spatial * 6 ch, padded 216->256)
_C2_COLS = 512                      # 4 pool2 slots * 128 (2x2 spatial * 16 ch, padded 64->128)
_FC_LANES = 128                     # all FC layers padded to 128 output lanes
_TB_MAX = 256                       # max batch tile (rows per grid step)


# ------------------------------ fused kernel ------------------------------- #

def _fused_forward_kernel(x_ref, w1_ref, b1_ref, w2_ref, b2_ref,
                          fw1_ref, fb1_ref, fw2_ref, fb2_ref, fw3_ref, fb3_ref,
                          o_ref):
    f32 = jnp.float32
    bf16 = jnp.bfloat16
    x = x_ref[...].astype(bf16)                                       # (TB, 196) bf16

    def conv_pool(xin, w_ref, b_ref, lanes):
        # relu(xin @ W_slot + b_slot) per 2x2-pool slot, then elementwise max.
        # Each slot is a static, 128-aligned lane slice of the prebuilt weight,
        # so the live intermediate stays (TB, lanes) instead of (TB, 4*lanes).
        def slot(s):
            w = w_ref[:, s * lanes:(s + 1) * lanes]                   # bf16
            b = b_ref[:, s * lanes:(s + 1) * lanes]                   # f32
            y = jnp.dot(xin, w, preferred_element_type=f32) + b
            return jnp.maximum(y, 0.0)
        return jnp.maximum(jnp.maximum(slot(0), slot(1)),
                           jnp.maximum(slot(2), slot(3)))

    # conv1 (+bias+ReLU) with maxpool1 fused into the slot max.
    h1 = conv_pool(x, w1_ref, b1_ref, 256)                            # (TB, 256) f32
    # conv2 (+bias+ReLU) with maxpool2 fused; result columns are the flatten
    # layout (torch view order is folded into the pre-permuted fc1 weight).
    flat = conv_pool(h1.astype(bf16), w2_ref, b2_ref, 128)            # (TB, 128) f32

    # FC chain: all weights padded to 128 lanes (padded cols have zero weight
    # and zero bias, so relu(0)=0 and they contribute nothing downstream).
    z = jnp.dot(flat.astype(bf16), fw1_ref[...], preferred_element_type=f32) + fb1_ref[...]
    z = jnp.maximum(z, 0.0)                                           # (TB, 128)
    z = jnp.dot(z.astype(bf16), fw2_ref[...], preferred_element_type=f32) + fb2_ref[...]
    z = jnp.maximum(z, 0.0)                                           # (TB, 128)
    z = jnp.dot(z.astype(bf16), fw3_ref[...], preferred_element_type=f32) + fb3_ref[...]
    o_ref[...] = z.astype(o_ref.dtype)                                # (TB, 128), cols 13.. are junk


def net_forward(x, prepared):
    """x: (B, 1, 14, 14) float32 (NCHW) -> (B, 13).  `prepared` = prepare_params(...)."""
    (w1big, b1big, w2big, b2big, fw1p, fb1r, fw2t, fb2r, fw3t, fb3r) = prepared
    assert x.shape[1:] == (1, _IN_H, _IN_W), x.shape
    B = x.shape[0]
    xf = x.reshape(B, _IN_FLAT).astype(jnp.float32)

    # Batch tile: single block for tiny batches; otherwise a multiple of 8,
    # chosen so the grid has >= 2 steps (both v7x TensorCores participate),
    # capped at _TB_MAX.  No input padding: Pallas masks the partial last block.
    if B < 16:
        tb = B
    else:
        half = -(-B // 2)
        tb = min(_TB_MAX, ((half + 7) // 8) * 8)
    grid = pl.cdiv(B, tb)

    full = lambda i: (0, 0)                   # resident weights: constant block index
    out = pl.pallas_call(
        _fused_forward_kernel,
        out_shape=jax.ShapeDtypeStruct((B, _FC_LANES), jnp.float32),
        grid=(grid,),
        in_specs=[
            pl.BlockSpec((tb, _IN_FLAT), lambda i: (i, 0)),
            pl.BlockSpec((_IN_FLAT, _C1_COLS), full), pl.BlockSpec((1, _C1_COLS), full),
            pl.BlockSpec((256, _C2_COLS), full),      pl.BlockSpec((1, _C2_COLS), full),
            pl.BlockSpec((128, _FC_LANES), full),     pl.BlockSpec((1, _FC_LANES), full),
            pl.BlockSpec((_FC_LANES, _FC_LANES), full), pl.BlockSpec((1, _FC_LANES), full),
            pl.BlockSpec((_FC_LANES, _FC_LANES), full), pl.BlockSpec((1, _FC_LANES), full),
        ],
        out_specs=pl.BlockSpec((tb, _FC_LANES), lambda i: (i, 0)),
        compiler_params=pltpu.CompilerParams(dimension_semantics=("parallel",)),
    )(xf, w1big, b1big, w2big, b2big, fw1p, fb1r, fw2t, fb2r, fw3t, fb3r)

    return out[:, :13]


# -------------------- one-time host-side weight preparation ----------------- #

def prepare_params(params):
    """Fold im2col, pooling layout, flatten permutation, transposes and lane
    padding into dense matmul weights; cast matmul weights to bf16.  Runs once,
    host-side (numpy)."""
    w1, b1, w2, b2, fw1, fb1, fw2, fb2, fw3, fb3 = params
    w1n = np.asarray(w1, np.float32)   # (6, 1, 3, 3)   OIHW
    b1n = np.asarray(b1, np.float32)   # (6,)
    w2n = np.asarray(w2, np.float32)   # (16, 6, 3, 3)
    b2n = np.asarray(b2, np.float32)   # (16,)
    fw1n = np.asarray(fw1, np.float32) # (40, 64)
    fb1n = np.asarray(fb1, np.float32) # (40,)
    fw2n = np.asarray(fw2, np.float32) # (24, 40)
    fb2n = np.asarray(fb2, np.float32) # (24,)
    fw3n = np.asarray(fw3, np.float32) # (13, 24)
    fb3n = np.asarray(fb3, np.float32) # (13,)

    # conv1 -> dense (196, 1024): column = slot1*256 + pos1*6 + c1,
    # slot1 = d1i*2 + d1j (pool1 window), pos1 = i*6 + j (pool1 output position).
    w1big = np.zeros((_IN_FLAT, _C1_COLS), np.float32)
    b1big = np.zeros((1, _C1_COLS), np.float32)
    for d1i in range(2):
        for d1j in range(2):
            s1 = d1i * 2 + d1j
            for i in range(6):
                for j in range(6):
                    oh, ow = 2 * i + d1i, 2 * j + d1j        # conv1 output coord
                    col0 = s1 * 256 + (i * 6 + j) * 6
                    b1big[0, col0:col0 + 6] = b1n
                    for ki in range(3):
                        for kj in range(3):
                            row = (oh + ki) * _IN_W + (ow + kj)
                            w1big[row, col0:col0 + 6] = w1n[:, 0, ki, kj]

    # conv2 -> dense (256, 512): row = pos1*6 + ci  (h1 column layout above),
    # column = slot2*128 + q*16 + co,  q = i2*2 + j2 (pool2 output position).
    w2big = np.zeros((256, _C2_COLS), np.float32)
    b2big = np.zeros((1, _C2_COLS), np.float32)
    for i2 in range(2):
        for j2 in range(2):
            q = i2 * 2 + j2
            for d2i in range(2):
                for d2j in range(2):
                    s2 = d2i * 2 + d2j
                    oh2, ow2 = 2 * i2 + d2i, 2 * j2 + d2j    # conv2 output coord
                    col0 = s2 * 128 + q * 16
                    b2big[0, col0:col0 + 16] = b2n
                    for ki in range(3):
                        for kj in range(3):
                            row0 = ((oh2 + ki) * 6 + (ow2 + kj)) * 6
                            for ci in range(6):
                                w2big[row0 + ci, col0:col0 + 16] = w2n[:, ci, ki, kj]

    # fc1 weight, permuted so the kernel's flat layout (q*16 + co) matches
    # torch's x.view(-1, 16*2*2) order (co*4 + q); padded to (128, 128)
    # (rows 64..127 and cols 40..127 zero) so every FC matmul is 128-lane dense.
    fw1p = np.zeros((128, _FC_LANES), np.float32)
    for q in range(4):
        for co in range(16):
            fw1p[q * 16 + co, :40] = fw1n[:, co * 4 + q]
    fb1r = np.zeros((1, _FC_LANES), np.float32); fb1r[0, :40] = fb1n

    fw2t = np.zeros((_FC_LANES, _FC_LANES), np.float32); fw2t[:40, :24] = fw2n.T
    fb2r = np.zeros((1, _FC_LANES), np.float32); fb2r[0, :24] = fb2n

    fw3t = np.zeros((_FC_LANES, _FC_LANES), np.float32); fw3t[:24, :13] = fw3n.T
    fb3r = np.zeros((1, _FC_LANES), np.float32); fb3r[0, :13] = fb3n

    bf = lambda a: jnp.asarray(a, jnp.bfloat16)   # matmul operands -> bf16 (f32 accumulation in-kernel)
    f = lambda a: jnp.asarray(a, jnp.float32)     # biases stay f32
    return (bf(w1big), f(b1big), bf(w2big), f(b2big),
            bf(fw1p), f(fb1r), bf(fw2t), f(fb2r), bf(fw3t), f(fb3r))


# --------------------------- reference / params ----------------------------- #

def reference_forward(x, params):
    """Pure-JAX re-implementation of the PyTorch forward (sanity check)."""
    w1, b1, w2, b2, fw1, fb1, fw2, fb2, fw3, fb3 = params
    dn = ('NCHW', 'OIHW', 'NCHW')
    neg_inf = jnp.float32(-jnp.inf)

    y = lax.conv_general_dilated(x, w1, (1, 1), 'VALID', dimension_numbers=dn)
    y = jnp.maximum(y + b1[None, :, None, None], 0.0)
    y = lax.reduce_window(y, neg_inf, lax.max, (1, 1, 2, 2), (1, 1, 2, 2), 'VALID')

    y = lax.conv_general_dilated(y, w2, (1, 1), 'VALID', dimension_numbers=dn)
    y = jnp.maximum(y + b2[None, :, None, None], 0.0)
    y = lax.reduce_window(y, neg_inf, lax.max, (1, 1, 2, 2), (1, 1, 2, 2), 'VALID')

    y = y.reshape(y.shape[0], -1)
    y = jnp.maximum(y @ fw1.T + fb1, 0.0)
    y = jnp.maximum(y @ fw2.T + fb2, 0.0)
    return y @ fw3.T + fb3


def init_params(key):
    """Deterministic PyTorch-default-style U(-1/sqrt(fan_in), 1/sqrt(fan_in)) init."""
    def uni(k, shape, fan_in):
        bound = 1.0 / float(fan_in) ** 0.5
        return jax.random.uniform(k, shape, jnp.float32, -bound, bound)

    ks = jax.random.split(key, 10)
    w1 = uni(ks[0], (6, 1, 3, 3), 1 * 3 * 3)
    b1 = uni(ks[1], (6,), 1 * 3 * 3)
    w2 = uni(ks[2], (16, 6, 3, 3), 6 * 3 * 3)
    b2 = uni(ks[3], (16,), 6 * 3 * 3)
    fw1 = uni(ks[4], (40, 64), 64)
    fb1 = uni(ks[5], (40,), 64)
    fw2 = uni(ks[6], (24, 40), 40)
    fb2 = uni(ks[7], (24,), 40)
    fw3 = uni(ks[8], (13, 24), 24)
    fb3 = uni(ks[9], (13,), 24)
    return (w1, b1, w2, b2, fw1, fb1, fw2, fb2, fw3, fb3)


if __name__ == "__main__":
    key = jax.random.PRNGKey(0)
    pkey, xkey, xkey2 = jax.random.split(key, 3)
    params = init_params(pkey)
    prepared = prepare_params(params)       # one-time host-side weight "compile"

    fwd = jax.jit(net_forward)

    # Small demo batch (input 1x14x14 -> flatten is exactly 16*2*2); grid=(1,).
    x = jax.random.normal(xkey, (2, 1, 14, 14), dtype=jnp.float32)
    out = jax.block_until_ready(fwd(x, prepared))
    assert out.shape == (2, 13), out.shape
    ref = jax.block_until_ready(reference_forward(x, params))
    assert jnp.allclose(out, ref, atol=3e-2, rtol=3e-2), (
        "mismatch vs pure-JAX reference", float(jnp.max(jnp.abs(out - ref))))

    # Larger batch exercises the multi-step grid + masked partial last block.
    xb = jax.random.normal(xkey2, (200, 1, 14, 14), dtype=jnp.float32)
    outb = jax.block_until_ready(fwd(xb, prepared))
    assert outb.shape == (200, 13), outb.shape
    refb = jax.block_until_ready(reference_forward(xb, params))
    assert jnp.allclose(outb, refb, atol=3e-2, rtol=3e-2), (
        "mismatch vs pure-JAX reference (batched)",
        float(jnp.max(jnp.abs(outb - refb))))

    print("KERNEL_OK")
</pallas_src>

<mosaic_0001>
module attributes {stable_mosaic.version = 11 : i64} {
  func.func @_fused_forward_kernel(%arg0: i32, %arg1: memref<2x196xf32, #tpu.memory_space<vmem>>, %arg2: memref<196x1024xbf16, #tpu.memory_space<vmem>>, %arg3: memref<1x1024xf32, #tpu.memory_space<vmem>>, %arg4: memref<256x512xbf16, #tpu.memory_space<vmem>>, %arg5: memref<1x512xf32, #tpu.memory_space<vmem>>, %arg6: memref<128x128xbf16, #tpu.memory_space<vmem>>, %arg7: memref<1x128xf32, #tpu.memory_space<vmem>>, %arg8: memref<128x128xbf16, #tpu.memory_space<vmem>>, %arg9: memref<1x128xf32, #tpu.memory_space<vmem>>, %arg10: memref<128x128xbf16, #tpu.memory_space<vmem>>, %arg11: memref<1x128xf32, #tpu.memory_space<vmem>>, %arg12: memref<2x128xf32, #tpu.memory_space<vmem>>) attributes {dimension_semantics = [#tpu.dimension_semantics<parallel>], iteration_bounds = array<i64: 1>, scalar_prefetch = 0 : i64, scratch_operands = 0 : i64, tpu.core_type = #tpu.core_type<tc>, window_params = [{transform_indices = @transform_0, window_bounds = array<i64: 2, 196>}, {pipeline_mode = #tpu.pipeline_mode<synchronous>, transform_indices = @transform_1, window_bounds = array<i64: 196, 1024>}, {pipeline_mode = #tpu.pipeline_mode<synchronous>, transform_indices = @transform_2, window_bounds = array<i64: 1, 1024>}, {pipeline_mode = #tpu.pipeline_mode<synchronous>, transform_indices = @transform_3, window_bounds = array<i64: 256, 512>}, {pipeline_mode = #tpu.pipeline_mode<synchronous>, transform_indices = @transform_4, window_bounds = array<i64: 1, 512>}, {pipeline_mode = #tpu.pipeline_mode<synchronous>, transform_indices = @transform_5, window_bounds = array<i64: 128, 128>}, {pipeline_mode = #tpu.pipeline_mode<synchronous>, transform_indices = @transform_6, window_bounds = array<i64: 1, 128>}, {pipeline_mode = #tpu.pipeline_mode<synchronous>, transform_indices = @transform_7, window_bounds = array<i64: 128, 128>}, {pipeline_mode = #tpu.pipeline_mode<synchronous>, transform_indices = @transform_8, window_bounds = array<i64: 1, 128>}, {pipeline_mode = #tpu.pipeline_mode<synchronous>, transform_indices = @transform_9, window_bounds = array<i64: 128, 128>}, {pipeline_mode = #tpu.pipeline_mode<synchronous>, transform_indices = @transform_10, window_bounds = array<i64: 1, 128>}, {transform_indices = @transform_11, window_bounds = array<i64: 2, 128>}]} {
    %c0 = arith.constant 0 : index
    %c0_0 = arith.constant 0 : index
    %0 = vector.load %arg1[%c0, %c0_0] : memref<2x196xf32, #tpu.memory_space<vmem>>, vector<2x196xf32>
    %1 = arith.truncf %0 : vector<2x196xf32> to vector<2x196xbf16>
    %c0_1 = arith.constant 0 : index
    %c0_2 = arith.constant 0 : index
    %2 = vector.load %arg2[%c0_1, %c0_2] : memref<196x1024xbf16, #tpu.memory_space<vmem>>, vector<196x256xbf16>
    %c0_3 = arith.constant 0 : index
    %c0_4 = arith.constant 0 : index
    %3 = vector.load %arg3[%c0_3, %c0_4] : memref<1x1024xf32, #tpu.memory_space<vmem>>, vector<1x256xf32>
    %cst = arith.constant dense<0.000000e+00> : vector<2x256xf32>
    %4 = tpu.matmul %1, %2, %cst {dimension_numbers = #tpu.dot_dimension_numbers<[1], [0], [0], [1], [0, 0, 1, 1], [], []>} : vector<2x196xbf16>, vector<196x256xbf16>, vector<2x256xf32> -> vector<2x256xf32>
    %5 = vector.broadcast %3 : vector<1x256xf32> to vector<2x256xf32>
    %6 = arith.addf %4, %5 : vector<2x256xf32>
    %cst_5 = arith.constant 0.000000e+00 : f32
    %7 = vector.broadcast %cst_5 : f32 to vector<2x256xf32>
    %8 = arith.maximumf %6, %7 : vector<2x256xf32>
    %c0_6 = arith.constant 0 : index
    %c256 = arith.constant 256 : index
    %9 = vector.load %arg2[%c0_6, %c256] : memref<196x1024xbf16, #tpu.memory_space<vmem>>, vector<196x256xbf16>
    %c0_7 = arith.constant 0 : index
    %c256_8 = arith.constant 256 : index
    %10 = vector.load %arg3[%c0_7, %c256_8] : memref<1x1024xf32, #tpu.memory_space<vmem>>, vector<1x256xf32>
    %cst_9 = arith.constant dense<0.000000e+00> : vector<2x256xf32>
    %11 = tpu.matmul %1, %9, %cst_9 {dimension_numbers = #tpu.dot_dimension_numbers<[1], [0], [0], [1], [0, 0, 1, 1], [], []>} : vector<2x196xbf16>, vector<196x256xbf16>, vector<2x256xf32> -> vector<2x256xf32>
    %12 = vector.broadcast %10 : vector<1x256xf32> to vector<2x256xf32>
    %13 = arith.addf %11, %12 : vector<2x256xf32>
    %cst_10 = arith.constant 0.000000e+00 : f32
    %14 = vector.broadcast %cst_10 : f32 to vector<2x256xf32>
    %15 = arith.maximumf %13, %14 : vector<2x256xf32>
    %16 = arith.maximumf %8, %15 : vector<2x256xf32>
    %c0_11 = arith.constant 0 : index
    %c512 = arith.constant 512 : index
    %17 = vector.load %arg2[%c0_11, %c512] : memref<196x1024xbf16, #tpu.memory_space<vmem>>, vector<196x256xbf16>
    %c0_12 = arith.constant 0 : index
    %c512_13 = arith.constant 512 : index
    %18 = vector.load %arg3[%c0_12, %c512_13] : memref<1x1024xf32, #tpu.memory_space<vmem>>, vector<1x256xf32>
    %cst_14 = arith.constant dense<0.000000e+00> : vector<2x256xf32>
    %19 = tpu.matmul %1, %17, %cst_14 {dimension_numbers = #tpu.dot_dimension_numbers<[1], [0], [0], [1], [0, 0, 1, 1], [], []>} : vector<2x196xbf16>, vector<196x256xbf16>, vector<2x256xf32> -> vector<2x256xf32>
    %20 = vector.broadcast %18 : vector<1x256xf32> to vector<2x256xf32>
    %21 = arith.addf %19, %20 : vector<2x256xf32>
    %cst_15 = arith.constant 0.000000e+00 : f32
    %22 = vector.broadcast %cst_15 : f32 to vector<2x256xf32>
    %23 = arith.maximumf %21, %22 : vector<2x256xf32>
    %c0_16 = arith.constant 0 : index
    %c768 = arith.constant 768 : index
    %24 = vector.load %arg2[%c0_16, %c768] : memref<196x1024xbf16, #tpu.memory_space<vmem>>, vector<196x256xbf16>
    %c0_17 = arith.constant 0 : index
    %c768_18 = arith.constant 768 : index
    %25 = vector.load %arg3[%c0_17, %c768_18] : memref<1x1024xf32, #tpu.memory_space<vmem>>, vector<1x256xf32>
    %cst_19 = arith.constant dense<0.000000e+00> : vector<2x256xf32>
    %26 = tpu.matmul %1, %24, %cst_19 {dimension_numbers = #tpu.dot_dimension_numbers<[1], [0], [0], [1], [0, 0, 1, 1], [], []>} : vector<2x196xbf16>, vector<196x256xbf16>, vector<2x256xf32> -> vector<2x256xf32>
    %27 = vector.broadcast %25 : vector<1x256xf32> to vector<2x256xf32>
    %28 = arith.addf %26, %27 : vector<2x256xf32>
    %cst_20 = arith.constant 0.000000e+00 : f32
    %29 = vector.broadcast %cst_20 : f32 to vector<2x256xf32>
    %30 = arith.maximumf %28, %29 : vector<2x256xf32>
    %31 = arith.maximumf %23, %30 : vector<2x256xf32>
    %32 = arith.maximumf %16, %31 : vector<2x256xf32>
    %33 = arith.truncf %32 : vector<2x256xf32> to vector<2x256xbf16>
    %c0_21 = arith.constant 0 : index
    %c0_22 = arith.constant 0 : index
    %34 = vector.load %arg4[%c0_21, %c0_22] : memref<256x512xbf16, #tpu.memory_space<vmem>>, vector<256x128xbf16>
    %c0_23 = arith.constant 0 : index
    %c0_24 = arith.constant 0 : index
    %35 = vector.load %arg5[%c0_23, %c0_24] : memref<1x512xf32, #tpu.memory_space<vmem>>, vector<1x128xf32>
    %cst_25 = arith.constant dense<0.000000e+00> : vector<2x128xf32>
    %36 = tpu.matmul %33, %34, %cst_25 {dimension_numbers = #tpu.dot_dimension_numbers<[1], [0], [0], [1], [0, 0, 1, 1], [], []>} : vector<2x256xbf16>, vector<256x128xbf16>, vector<2x128xf32> -> vector<2x128xf32>
    %37 = vector.broadcast %35 : vector<1x128xf32> to vector<2x128xf32>
    %38 = arith.addf %36, %37 : vector<2x128xf32>
    %cst_26 = arith.constant 0.000000e+00 : f32
    %39 = vector.broadcast %cst_26 : f32 to vector<2x128xf32>
    %40 = arith.maximumf %38, %39 : vector<2x128xf32>
    %c0_27 = arith.constant 0 : index
    %c128 = arith.constant 128 : index
    %41 = vector.load %arg4[%c0_27, %c128] : memref<256x512xbf16, #tpu.memory_space<vmem>>, vector<256x128xbf16>
    %c0_28 = arith.constant 0 : index
    %c128_29 = arith.constant 128 : index
    %42 = vector.load %arg5[%c0_28, %c128_29] : memref<1x512xf32, #tpu.memory_space<vmem>>, vector<1x128xf32>
    %cst_30 = arith.constant dense<0.000000e+00> : vector<2x128xf32>
    %43 = tpu.matmul %33, %41, %cst_30 {dimension_numbers = #tpu.dot_dimension_numbers<[1], [0], [0], [1], [0, 0, 1, 1], [], []>} : vector<2x256xbf16>, vector<256x128xbf16>, vector<2x128xf32> -> vector<2x128xf32>
    %44 = vector.broadcast %42 : vector<1x128xf32> to vector<2x128xf32>
    %45 = arith.addf %43, %44 : vector<2x128xf32>
    %cst_31 = arith.constant 0.000000e+00 : f32
    %46 = vector.broadcast %cst_31 : f32 to vector<2x128xf32>
    %47 = arith.maximumf %45, %46 : vector<2x128xf32>
    %48 = arith.maximumf %40, %47 : vector<2x128xf32>
    %c0_32 = arith.constant 0 : index
    %c256_33 = arith.constant 256 : index
    %49 = vector.load %arg4[%c0_32, %c256_33] : memref<256x512xbf16, #tpu.memory_space<vmem>>, vector<256x128xbf16>
    %c0_34 = arith.constant 0 : index
    %c256_35 = arith.constant 256 : index
    %50 = vector.load %arg5[%c0_34, %c256_35] : memref<1x512xf32, #tpu.memory_space<vmem>>, vector<1x128xf32>
    %cst_36 = arith.constant dense<0.000000e+00> : vector<2x128xf32>
    %51 = tpu.matmul %33, %49, %cst_36 {dimension_numbers = #tpu.dot_dimension_numbers<[1], [0], [0], [1], [0, 0, 1, 1], [], []>} : vector<2x256xbf16>, vector<256x128xbf16>, vector<2x128xf32> -> vector<2x128xf32>
    %52 = vector.broadcast %50 : vector<1x128xf32> to vector<2x128xf32>
    %53 = arith.addf %51, %52 : vector<2x128xf32>
    %cst_37 = arith.constant 0.000000e+00 : f32
    %54 = vector.broadcast %cst_37 : f32 to vector<2x128xf32>
    %55 = arith.maximumf %53, %54 : vector<2x128xf32>
    %c0_38 = arith.constant 0 : index
    %c384 = arith.constant 384 : index
    %56 = vector.load %arg4[%c0_38, %c384] : memref<256x512xbf16, #tpu.memory_space<vmem>>, vector<256x128xbf16>
    %c0_39 = arith.constant 0 : index
    %c384_40 = arith.constant 384 : index
    %57 = vector.load %arg5[%c0_39, %c384_40] : memref<1x512xf32, #tpu.memory_space<vmem>>, vector<1x128xf32>
    %cst_41 = arith.constant dense<0.000000e+00> : vector<2x128xf32>
    %58 = tpu.matmul %33, %56, %cst_41 {dimension_numbers = #tpu.dot_dimension_numbers<[1], [0], [0], [1], [0, 0, 1, 1], [], []>} : vector<2x256xbf16>, vector<256x128xbf16>, vector<2x128xf32> -> vector<2x128xf32>
    %59 = vector.broadcast %57 : vector<1x128xf32> to vector<2x128xf32>
    %60 = arith.addf %58, %59 : vector<2x128xf32>
    %cst_42 = arith.constant 0.000000e+00 : f32
    %61 = vector.broadcast %cst_42 : f32 to vector<2x128xf32>
    %62 = arith.maximumf %60, %61 : vector<2x128xf32>
    %63 = arith.maximumf %55, %62 : vector<2x128xf32>
    %64 = arith.maximumf %48, %63 : vector<2x128xf32>
    %65 = arith.truncf %64 : vector<2x128xf32> to vector<2x128xbf16>
    %c0_43 = arith.constant 0 : index
    %c0_44 = arith.constant 0 : index
    %66 = vector.load %arg6[%c0_43, %c0_44] : memref<128x128xbf16, #tpu.memory_space<vmem>>, vector<128x128xbf16>
    %cst_45 = arith.constant dense<0.000000e+00> : vector<2x128xf32>
    %67 = tpu.matmul %65, %66, %cst_45 {dimension_numbers = #tpu.dot_dimension_numbers<[1], [0], [0], [1], [0, 0, 1, 1], [], []>} : vector<2x128xbf16>, vector<128x128xbf16>, vector<2x128xf32> -> vector<2x128xf32>
    %c0_46 = arith.constant 0 : index
    %c0_47 = arith.constant 0 : index
    %68 = vector.load %arg7[%c0_46, %c0_47] : memref<1x128xf32, #tpu.memory_space<vmem>>, vector<1x128xf32>
    %69 = vector.broadcast %68 : vector<1x128xf32> to vector<2x128xf32>
    %70 = arith.addf %67, %69 : vector<2x128xf32>
    %cst_48 = arith.constant 0.000000e+00 : f32
    %71 = vector.broadcast %cst_48 : f32 to vector<2x128xf32>
    %72 = arith.maximumf %70, %71 : vector<2x128xf32>
    %73 = arith.truncf %72 : vector<2x128xf32> to vector<2x128xbf16>
    %c0_49 = arith.constant 0 : index
    %c0_50 = arith.constant 0 : index
    %74 = vector.load %arg8[%c0_49, %c0_50] : memref<128x128xbf16, #tpu.memory_space<vmem>>, vector<128x128xbf16>
    %cst_51 = arith.constant dense<0.000000e+00> : vector<2x128xf32>
    %75 = tpu.matmul %73, %74, %cst_51 {dimension_numbers = #tpu.dot_dimension_numbers<[1], [0], [0], [1], [0, 0, 1, 1], [], []>} : vector<2x128xbf16>, vector<128x128xbf16>, vector<2x128xf32> -> vector<2x128xf32>
    %c0_52 = arith.constant 0 : index
    %c0_53 = arith.constant 0 : index
    %76 = vector.load %arg9[%c0_52, %c0_53] : memref<1x128xf32, #tpu.memory_space<vmem>>, vector<1x128xf32>
    %77 = vector.broadcast %76 : vector<1x128xf32> to vector<2x128xf32>
    %78 = arith.addf %75, %77 : vector<2x128xf32>
    %cst_54 = arith.constant 0.000000e+00 : f32
    %79 = vector.broadcast %cst_54 : f32 to vector<2x128xf32>
    %80 = arith.maximumf %78, %79 : vector<2x128xf32>
    %81 = arith.truncf %80 : vector<2x128xf32> to vector<2x128xbf16>
    %c0_55 = arith.constant 0 : index
    %c0_56 = arith.constant 0 : index
    %82 = vector.load %arg10[%c0_55, %c0_56] : memref<128x128xbf16, #tpu.memory_space<vmem>>, vector<128x128xbf16>
    %cst_57 = arith.constant dense<0.000000e+00> : vector<2x128xf32>
    %83 = tpu.matmul %81, %82, %cst_57 {dimension_numbers = #tpu.dot_dimension_numbers<[1], [0], [0], [1], [0, 0, 1, 1], [], []>} : vector<2x128xbf16>, vector<128x128xbf16>, vector<2x128xf32> -> vector<2x128xf32>
    %c0_58 = arith.constant 0 : index
    %c0_59 = arith.constant 0 : index
    %84 = vector.load %arg11[%c0_58, %c0_59] : memref<1x128xf32, #tpu.memory_space<vmem>>, vector<1x128xf32>
    %85 = vector.broadcast %84 : vector<1x128xf32> to vector<2x128xf32>
    %86 = arith.addf %83, %85 : vector<2x128xf32>
    %c0_60 = arith.constant 0 : index
    %c0_61 = arith.constant 0 : index
    %87 = vector.load %arg12[%c0_60, %c0_61] : memref<2x128xf32, #tpu.memory_space<vmem>>, vector<2x128xf32>
    tpu.vector_store %arg12[%c0_60, %c0_61], %86 {strides = array<i32>} : memref<2x128xf32, #tpu.memory_space<vmem>>, vector<2x128xf32>,
    return
  }
  func.func @transform_0(%arg0: i32) -> (i32, i32) {
    %c0_i32 = arith.constant 0 : i32
    %c0_i32_0 = arith.constant 0 : i32
    return %arg0, %c0_i32 : i32, i32
  }
  func.func @transform_1(%arg0: i32) -> (i32, i32) {
    %c0_i32 = arith.constant 0 : i32
    %c0_i32_0 = arith.constant 0 : i32
    %c0_i32_1 = arith.constant 0 : i32
    return %c0_i32, %c0_i32_0 : i32, i32
  }
  func.func @transform_2(%arg0: i32) -> (i32, i32) {
    %c0_i32 = arith.constant 0 : i32
    %c0_i32_0 = arith.constant 0 : i32
    %c0_i32_1 = arith.constant 0 : i32
    return %c0_i32, %c0_i32_0 : i32, i32
  }
  func.func @transform_3(%arg0: i32) -> (i32, i32) {
    %c0_i32 = arith.constant 0 : i32
    %c0_i32_0 = arith.constant 0 : i32
    %c0_i32_1 = arith.constant 0 : i32
    return %c0_i32, %c0_i32_0 : i32, i32
  }
  func.func @transform_4(%arg0: i32) -> (i32, i32) {
    %c0_i32 = arith.constant 0 : i32
    %c0_i32_0 = arith.constant 0 : i32
    %c0_i32_1 = arith.constant 0 : i32
    return %c0_i32, %c0_i32_0 : i32, i32
  }
  func.func @transform_5(%arg0: i32) -> (i32, i32) {
    %c0_i32 = arith.constant 0 : i32
    %c0_i32_0 = arith.constant 0 : i32
    %c0_i32_1 = arith.constant 0 : i32
    return %c0_i32, %c0_i32_0 : i32, i32
  }
  func.func @transform_6(%arg0: i32) -> (i32, i32) {
    %c0_i32 = arith.constant 0 : i32
    %c0_i32_0 = arith.constant 0 : i32
    %c0_i32_1 = arith.constant 0 : i32
    return %c0_i32, %c0_i32_0 : i32, i32
  }
  func.func @transform_7(%arg0: i32) -> (i32, i32) {
    %c0_i32 = arith.constant 0 : i32
    %c0_i32_0 = arith.constant 0 : i32
    %c0_i32_1 = arith.constant 0 : i32
    return %c0_i32, %c0_i32_0 : i32, i32
  }
  func.func @transform_8(%arg0: i32) -> (i32, i32) {
    %c0_i32 = arith.constant 0 : i32
    %c0_i32_0 = arith.constant 0 : i32
    %c0_i32_1 = arith.constant 0 : i32
    return %c0_i32, %c0_i32_0 : i32, i32
  }
  func.func @transform_9(%arg0: i32) -> (i32, i32) {
    %c0_i32 = arith.constant 0 : i32
    %c0_i32_0 = arith.constant 0 : i32
    %c0_i32_1 = arith.constant 0 : i32
    return %c0_i32, %c0_i32_0 : i32, i32
  }
  func.func @transform_10(%arg0: i32) -> (i32, i32) {
    %c0_i32 = arith.constant 0 : i32
    %c0_i32_0 = arith.constant 0 : i32
    %c0_i32_1 = arith.constant 0 : i32
    return %c0_i32, %c0_i32_0 : i32, i32
  }
  func.func @transform_11(%arg0: i32) -> (i32, i32) {
    %c0_i32 = arith.constant 0 : i32
    %c0_i32_0 = arith.constant 0 : i32
    return %arg0, %c0_i32 : i32, i32
  }
}

</mosaic_0001>

<bundles_post_ra>
// kernel: net_forward.1
= control target key start
LH: loop header
LB: loop body
LE: loop exit
PB: predicated region body
PF: predicated region fallthrough
CT: control target
= control target key end

     0   :  { %16 = vsyncpa [#allocation3], 0  ;;  %s2943_s0 = inlined_call_operand.vmem [shape: f32[2,196], index: 0, kind: input, shape index: {}]   ;;  %s2944_s1 = inlined_call_operand.hbm [shape: bf16[196,1024], index: 1, kind: input, shape index: {}]   ;;  %s2945_s2 = inlined_call_operand.hbm [shape: f32[1,1024], index: 2, kind: input, shape index: {}]   ;;  %s2946_s3 = inlined_call_operand.hbm [shape: bf16[256,512], index: 3, kind: input, shape index: {}]   ;;  %s2947_s4 = inlined_call_operand.hbm [shape: f32[1,512], index: 4, kind: input, shape index: {}]   ;;  %s2948_s5 = inlined_call_operand.vmem [shape: bf16[128,128], index: 5, kind: input, shape index: {}]   ;;  %s2949_s6 = inlined_call_operand.vmem [shape: f32[1,128], index: 6, kind: input, shape index: {}]   ;;  %s2950_s7 = inlined_call_operand.hbm [shape: bf16[128,128], index: 7, kind: input, shape index: {}]   ;;  %s2951_s8 = inlined_call_operand.vmem [shape: f32[1,128], index: 8, kind: input, shape index: {}]   ;;  %s2952_s9 = inlined_call_operand.vmem [shape: bf16[128,128], index: 9, kind: input, shape index: {}]   ;;  %s2953_s10 = inlined_call_operand.vmem [shape: f32[1,128], index: 10, kind: input, shape index: {}]   ;;  %s2954_s11 = inlined_call_operand.hbm [shape: f32[2,128], index: 11, kind: output, shape index: {}]  }
   0x1   :  { %17 = vsyncpa [#allocation6], 0 }
   0x2   :  { %18 = vsyncpa [#allocation9], 0 }
   0x3   :  { %19 = vsyncpa [#allocation4], 0  ;;  %s2671_s17 = smov [#allocation5]   ;;  %s2672_s19 = smov [#allocation8]  }
   0x4   :  { %s40_s18 = sshll.u32 %s2671_s17, 4  ;;  %s62_s20 = sshll.u32 %s2672_s19, 4  ;;  %s41_s18 = int_to_ptr.vmem [resolvable:$true] %s40_s18  ;;  %s63_s20 = int_to_ptr.vmem [resolvable:$true] %s62_s20 }
   0x5   :  { %s2531_s23 = scalar_lea.hbm %s2945_s2, 128 }
   0x6   :  { %p2532_p0 = scmp.ne.s32.totalorder %s2945_s2, %s2531_s23  ;;  %p2535_p1 = scmp.lt.u32.totalorder %s2531_s23, %s2945_s2 }
   0x8   :  { %p2537_p2 = pnand %p2535_p1, %p2532_p0 }
   0xa   :  { %2540 = shalt.err (!%p2537_p2)
}
   0xb   :  { %s2541_s28 = scalar_lea.vmem %s41_s18, 128  ;;  %p2546_p4 = scmp.lt.s32.totalorder %s41_s18, %s41_s18 }
   0xc   :  { %p2542_p3 = scmp.ne.s32.totalorder %s41_s18, %s2541_s28  ;;  %p2547_p5 = scmp.lt.s32.totalorder %s2541_s28, %s2541_s28 }
   0xe   :  { %p2548_p6 = por %p2547_p5, %p2546_p4 }
  0x10   :  { %p2549_p7 = pnand %p2548_p6, %p2542_p3 }
  0x12   :  { %2552 = shalt.err (!%p2549_p7)
}
  0x13   :  { %43 = dma.hbm_to_vmem [thread:$0]  %s2945_s2, 128, %s41_s18, [#allocation6]  }
  0x14   :  { %s2553_s14 = scalar_lea.hbm %s2947_s4, 64 }
  0x15   :  { %p2554_p8 = scmp.ne.s32.totalorder %s2947_s4, %s2553_s14  ;;  %p2557_p9 = scmp.lt.u32.totalorder %s2553_s14, %s2947_s4 }
  0x17   :  { %p2559_p10 = pnand %p2557_p9, %p2554_p8 }
  0x19   :  { %2562 = shalt.err (!%p2559_p10)
}
  0x1a   :  { %s2563_s21 = scalar_lea.vmem %s63_s20, 64  ;;  %p2568_p12 = scmp.lt.s32.totalorder %s63_s20, %s63_s20 }
  0x1b   :  { %p2564_p11 = scmp.ne.s32.totalorder %s63_s20, %s2563_s21  ;;  %p2569_p13 = scmp.lt.s32.totalorder %s2563_s21, %s2563_s21 }
  0x1d   :  { %p2570_p0 = por %p2569_p13, %p2568_p12 }
  0x1f   :  { %p2571_p1 = pnand %p2570_p0, %p2564_p11 }
  0x21   :  { %2574 = shalt.err (!%p2571_p1)
}
  0x22   :  { %65 = dma.hbm_to_vmem [thread:$0]  %s2947_s4, 64, %s63_s20, [#allocation9]  }
  0x23   :  { %s2673_s22 = smov [#allocation2]   ;;  %s2575_s26 = scalar_lea.hbm %s2944_s1, 12800 }
  0x24   :  { %s27_s23 = sshll.u32 %s2673_s22, 4  ;;  %p2576_p2 = scmp.ne.s32.totalorder %s2944_s1, %s2575_s26  ;;  %s28_s23 = int_to_ptr.vmem [resolvable:$true] %s27_s23 }
  0x25   :  { %p2579_p3 = scmp.lt.u32.totalorder %s2575_s26, %s2944_s1 }
  0x27   :  { %p2581_p4 = pnand %p2579_p3, %p2576_p2 }
  0x29   :  { %2584 = shalt.err (!%p2581_p4)
}
  0x2a   :  { %s2585_s12 = scalar_lea.vmem %s28_s23, 12800  ;;  %p2590_p6 = scmp.lt.s32.totalorder %s28_s23, %s28_s23 }
  0x2b   :  { %p2586_p5 = scmp.ne.s32.totalorder %s28_s23, %s2585_s12  ;;  %p2591_p7 = scmp.lt.s32.totalorder %s2585_s12, %s2585_s12 }
  0x2d   :  { %p2592_p8 = por %p2591_p7, %p2590_p6 }
  0x2f   :  { %p2593_p9 = pnand %p2592_p8, %p2586_p5 }
  0x31   :  { %2596 = shalt.err (!%p2593_p9)
}
  0x32   :  { %s2674_s4 = smov 512   ;;  %s2675_s20 = smov 32  }
  0x33   :  { %33 = dma.hbm_to_vmem [thread:$0]  %s2944_s1, 12800, %s28_s23, [#allocation3], %s2674_s4, %s2674_s4, %s2675_s20  }
  0x34   :  { %s2676_s15 = smov [#allocation7]   ;;  %s2597_s21 = scalar_lea.hbm %s2946_s3, 8192 }
  0x35   :  { %s49_s16 = sshll.u32 %s2676_s15, 4  ;;  %p2598_p10 = scmp.ne.s32.totalorder %s2946_s3, %s2597_s21  ;;  %s50_s16 = int_to_ptr.vmem [resolvable:$true] %s49_s16 }
  0x36   :  { %p2601_p11 = scmp.lt.u32.totalorder %s2597_s21, %s2946_s3 }
  0x38   :  { %p2603_p12 = pnand %p2601_p11, %p2598_p10 }
  0x3a   :  { %2606 = shalt.err (!%p2603_p12)
}
  0x3b   :  { %s2607_s25 = scalar_lea.vmem %s50_s16, 8192  ;;  %p2612_p0 = scmp.lt.s32.totalorder %s50_s16, %s50_s16 }
  0x3c   :  { %p2608_p13 = scmp.ne.s32.totalorder %s50_s16, %s2607_s25  ;;  %p2613_p1 = scmp.lt.s32.totalorder %s2607_s25, %s2607_s25 }
  0x3e   :  { %p2614_p2 = por %p2613_p1, %p2612_p0 }
  0x40   :  { %p2615_p3 = pnand %p2614_p2, %p2608_p13 }
  0x42   :  { %2618 = shalt.err (!%p2615_p3)
}
  0x43   :  { %s2677_s1 = smov 256   ;;  %s2678_s23 = smov 16  }
  0x44   :  { %55 = dma.hbm_to_vmem [thread:$0]  %s2946_s3, 8192, %s50_s16, [#allocation6], %s2677_s1, %s2677_s1, %s2678_s23  }
  0x45   :  { %s2679_s28 = smov [#allocation10]   ;;  %s2619_s4 = scalar_lea.hbm %s2950_s7, 1024 }
  0x46   :  { %s75_s29 = sshll.u32 %s2679_s28, 4  ;;  %p2620_p4 = scmp.ne.s32.totalorder %s2950_s7, %s2619_s4  ;;  %s76_s29 = int_to_ptr.vmem [resolvable:$true] %s75_s29 }
  0x47   :  { %p2623_p5 = scmp.lt.u32.totalorder %s2619_s4, %s2950_s7 }
  0x49   :  { %p2625_p6 = pnand %p2623_p5, %p2620_p4 }
  0x4b   :  { %2628 = shalt.err (!%p2625_p6)
}
  0x4c   :  { %s2629_s17 = scalar_lea.vmem %s76_s29, 1024  ;;  %p2634_p8 = scmp.lt.s32.totalorder %s76_s29, %s76_s29 }
  0x4d   :  { %p2630_p7 = scmp.ne.s32.totalorder %s76_s29, %s2629_s17  ;;  %p2635_p9 = scmp.lt.s32.totalorder %s2629_s17, %s2629_s17 }
  0x4f   :  { %p2636_p10 = por %p2635_p9, %p2634_p8 }
  0x51   :  { %p2637_p11 = pnand %p2636_p10, %p2630_p7 }
  0x53   :  { %2640 = shalt.err (!%p2637_p11)
}
  0x54   :  { %s2680_s3 = smov 64   ;;  %s2681_s16 = smov 4  }
  0x55   :  { %81 = dma.hbm_to_vmem [thread:$0]  %s2950_s7, 1024, %s76_s29, [#allocation9], %s2680_s3, %s2680_s3, %s2681_s16  }
  0x56   :  { %2663 = dma.done.wait [#allocation3], 12800  }
  0x57   :  { %2664 = vsyncadd [#allocation3], 4294954496 }
  0x58   :  { %2665 = dma.done.wait [#allocation6], 8320  }
  0x59   :  { %2666 = vsyncadd [#allocation6], 4294958976 }
  0x5a   :  { %2667 = dma.done.wait [#allocation9], 1088  }
  0x5b   :  { %2668 = vsyncadd [#allocation9], 4294966208  ;;  %v118_v0 = vld [vmem:[#allocation2] sm:$0xff]  ;;  %v334_v2 = vld [vmem:[#allocation2 + $0x8] sm:$0xff]  ;;  %vm280_vm0 = vcmask 556032   ;;  %vm284_vm1 = vcmask 1041408  }
  0x5c   :  { %v119_v1 = vld [vmem:[#allocation2 + $0x20] sm:$0xff]  ;;  %v335_v4 = vld [vmem:[#allocation2 + $0x28] sm:$0xff]  ;;  %vm2683_vm2 = vmmov 0   ;;  %s2684_s30 = smov [#allocation11]  }
  0x5d   :  { %v2040_v3 = vcombine.high %v118_v0, %v119_v1  ;;  %v2039_v5 = vcombine.low %v118_v0, %v119_v1  ;;  %v120_v6 = vld [vmem:[#allocation2 + $0x40] sm:$0xff]  ;;  %v2068_v8 = vcombine.high %v334_v2, %v335_v4  ;;  %v2067_v9 = vcombine.low %v334_v2, %v335_v4  ;;  %v336_v11 = vld [vmem:[#allocation2 + $0x48] sm:$0xff]  ;;  %s2027_s12 = sshll.u32 %s2684_s30, 4  ;;  %s2028_s12 = int_to_ptr.vmem [resolvable:$true] %s2027_s12 }
  0x5e   :  { %v121_v7 = vld [vmem:[#allocation2 + $0x60] sm:$0xff]  ;;  %v337_v12 = vld [vmem:[#allocation2 + $0x68] sm:$0xff]  ;;  %p2646_p13 = scmp.lt.s32.totalorder %s2028_s12, %s2028_s12 }
  0x5f   :  { %v2042_v10 = vcombine.high %v120_v6, %v121_v7  ;;  %v122_v13 = vld [vmem:[#allocation2 + $0x80] sm:$0xff]  ;;  %291 = vmatprep.subr.bf16.mxu0 %v2040_v3  ;;  %v2070_v14 = vcombine.high %v336_v11, %v337_v12  ;;  %v338_v16 = vld [vmem:[#allocation2 + $0x88] sm:$0xff]  ;;  %502 = vmatprep.subr.bf16.mxu1 %v2068_v8  ;;  %v2041_v18 = vcombine.low %v120_v6, %v121_v7 }
  0x60   :  { %v123_v15 = vld [vmem:[#allocation2 + $0xa0] sm:$0xff]  ;;  %v339_v17 = vld [vmem:[#allocation2 + $0xa8] sm:$0xff]  ;;  %292 = vmatpush1.bf16.msra.mxu0 %v2039_v5  ;;  %503 = vmatpush1.bf16.msra.mxu1 %v2067_v9  ;;  %v2069_v19 = vcombine.low %v336_v11, %v337_v12 }
  0x61   :  { %293 = vmatprep.subr.bf16.mxu0 %v2042_v10  ;;  %v2044_v20 = vcombine.high %v122_v13, %v123_v15  ;;  %504 = vmatprep.subr.bf16.mxu1 %v2070_v14  ;;  %v2072_v21 = vcombine.high %v338_v16, %v339_v17  ;;  %v124_v22 = vld [vmem:[#allocation2 + $0xc0] sm:$0xff]  ;;  %v340_v24 = vld [vmem:[#allocation2 + $0xc8] sm:$0xff]  ;;  %v2043_v26 = vcombine.low %v122_v13, %v123_v15 }
  0x62   :  { %v125_v23 = vld [vmem:[#allocation2 + $0xe0] sm:$0xff]  ;;  %v341_v25 = vld [vmem:[#allocation2 + $0xe8] sm:$0xff]  ;;  %v2071_v27 = vcombine.low %v338_v16, %v339_v17 }
  0x63   :  { %v2046_v28 = vcombine.high %v124_v22, %v125_v23  ;;  %v2074_v29 = vcombine.high %v340_v24, %v341_v25  ;;  %v126_v30 = vld [vmem:[#allocation2 + $0x100] sm:$0xff]  ;;  %v342_v32 = vld [vmem:[#allocation2 + $0x108] sm:$0xff]  ;;  %v2045_v34 = vcombine.low %v124_v22, %v125_v23  ;;  %v2073_v35 = vcombine.low %v340_v24, %v341_v25 }
  0x64   :  { %294 = vmatpush1.bf16.msra.mxu0 %v2041_v18  ;;  %505 = vmatpush1.bf16.msra.mxu1 %v2069_v19  ;;  %v127_v31 = vld [vmem:[#allocation2 + $0x120] sm:$0xff]  ;;  %v343_v33 = vld [vmem:[#allocation2 + $0x128] sm:$0xff] }
  0x65   :  { %295 = vmatprep.subr.bf16.mxu0 %v2044_v20  ;;  %506 = vmatprep.subr.bf16.mxu1 %v2072_v21  ;;  %v2048_v36 = vcombine.high %v126_v30, %v127_v31  ;;  %v2076_v37 = vcombine.high %v342_v32, %v343_v33  ;;  %v128_v38 = vld [vmem:[#allocation2 + $0x140] sm:$0xff]  ;;  %v344_v40 = vld [vmem:[#allocation2 + $0x148] sm:$0xff]  ;;  %v2047_v42 = vcombine.low %v126_v30, %v127_v31 }
  0x66   :  { %v129_v39 = vld [vmem:[#allocation2 + $0x160] sm:$0xff]  ;;  %v345_v41 = vld [vmem:[#allocation2 + $0x168] sm:$0xff]  ;;  %v2075_v43 = vcombine.low %v342_v32, %v343_v33 }
  0x67   :  { %v2050_v44 = vcombine.high %v128_v38, %v129_v39  ;;  %v2808_v45 = vld.sshfl [vmem:[%s2943_s0] sm:$0x33 pattern:$0x76325410]  ;;  %v2078_v46 = vcombine.high %v344_v40, %v345_v41  ;;  %v346_v50 = vld [vmem:[#allocation2 + $0x188] sm:$0xff]  ;;  %v2049_v52 = vcombine.low %v128_v38, %v129_v39  ;;  %v2077_v54 = vcombine.low %v344_v40, %v345_v41  ;;  %v547_v40 = vld [vmem:[#allocation2 + $0x10] sm:$0xff] }
  0x68   :  { %296 = vmatpush1.bf16.msra.mxu0 %v2043_v26  ;;  %507 = vmatpush1.bf16.msra.mxu1 %v2071_v27  ;;  %v130_v47 = vld [vmem:[#allocation2 + $0x180] sm:$0xff]  ;;  %v113_v49 = vcombine.high %v2808_v45, %v2808_v45  ;;  %v347_v51 = vld [vmem:[#allocation2 + $0x1a8] sm:$0xff]  ;;  %v548_v41 = vld [vmem:[#allocation2 + $0x30] sm:$0xff] }
  0x69   :  { %297 = vmatprep.subr.bf16.mxu0 %v2046_v28  ;;  %508 = vmatprep.subr.bf16.mxu1 %v2074_v29  ;;  %v131_v48 = vld [vmem:[#allocation2 + $0x1a0] sm:$0xff]  ;;  %v2080_v56 = vcombine.high %v346_v50, %v347_v51  ;;  %v348_v59 = vld [vmem:[#allocation2 + $0x1c8] sm:$0xff]  ;;  %v2079_v62 = vcombine.low %v346_v50, %v347_v51  ;;  %v2096_v50 = vcombine.high %v547_v40, %v548_v41  ;;  %v760_v51 = vld [vmem:[#allocation2 + $0x58] sm:$0xff] }
  0x6a   :  { %v2812_v53 = vpack.c.bf16 %v113_v49, %v113_v49  ;;  %v2052_v55 = vcombine.high %v130_v47, %v131_v48  ;;  %v132_v57 = vld [vmem:[#allocation2 + $0x1c0] sm:$0xff]  ;;  %v349_v60 = vld [vmem:[#allocation2 + $0x1e8] sm:$0xff]  ;;  %v2051_v61 = vcombine.low %v130_v47, %v131_v48  ;;  %v549_v48 = vld [vmem:[#allocation2 + $0x50] sm:$0xff] }
  0x6b   :  { %v133_v58 = vld [vmem:[#allocation2 + $0x1e0] sm:$0xff]  ;;  %v2082_v0 = vcombine.high %v348_v59, %v349_v60  ;;  %v350_v3 = vld [vmem:[#allocation2 + $0x208] sm:$0xff]  ;;  %v2081_v6 = vcombine.low %v348_v59, %v349_v60  ;;  %v550_v49 = vld [vmem:[#allocation2 + $0x70] sm:$0xff] }
  0x6c   :  { %298 = vmatpush1.bf16.msra.mxu0 %v2045_v34  ;;  %509 = vmatpush1.bf16.msra.mxu1 %v2073_v35  ;;  %v2054_v63 = vcombine.high %v132_v57, %v133_v58  ;;  %v134_v1 = vld [vmem:[#allocation2 + $0x200] sm:$0xff]  ;;  %v351_v4 = vld [vmem:[#allocation2 + $0x228] sm:$0xff]  ;;  %v2053_v5 = vcombine.low %v132_v57, %v133_v58  ;;  %v551_v57 = vld [vmem:[#allocation2 + $0x90] sm:$0xff]  ;;  %v2098_v60 = vcombine.high %v549_v48, %v550_v49 }
  0x6d   :  { %299 = vmatprep.subr.bf16.mxu0 %v2048_v36  ;;  %510 = vmatprep.subr.bf16.mxu1 %v2076_v37  ;;  %v135_v2 = vld [vmem:[#allocation2 + $0x220] sm:$0xff]  ;;  %v2084_v9 = vcombine.high %v350_v3, %v351_v4  ;;  %v358_v12 = vld [vmem:[#allocation2 + $0x308] sm:$0x33]  ;;  %v2083_v16 = vcombine.low %v350_v3, %v351_v4  ;;  %v552_v58 = vld [vmem:[#allocation2 + $0xb0] sm:$0xff] }
  0x6e   :  { %2066 = vmatprep.mubr.msk.bf16.mxu0 %vm280_vm0, %v2812_v53  ;;  %2094 = vmatprep.mubr.msk.bf16.mxu1 %vm280_vm0, %v2812_v53  ;;  %v2056_v7 = vcombine.high %v134_v1, %v135_v2  ;;  %v136_v8 = vld [vmem:[#allocation2 + $0x240] sm:$0xff]  ;;  %v352_v13 = vld [vmem:[#allocation2 + $0x248] sm:$0xff]  ;;  %v2055_v15 = vcombine.low %v134_v1, %v135_v2  ;;  %v2091_v23 = vcombine.low %v358_v12, %v358_v12  ;;  %v554_v1 = vld [vmem:[#allocation2 + $0xf0] sm:$0xff] }
  0x6f   :  { %v137_v10 = vld [vmem:[#allocation2 + $0x260] sm:$0xff]  ;;  %v353_v14 = vld [vmem:[#allocation2 + $0x268] sm:$0xff]  ;;  %v2092_v47 = vcombine.high %v358_v12, %v358_v12  ;;  %v2100_v3 = vcombine.high %v551_v57, %v552_v58  ;;  %v764_v4 = vld [vmem:[#allocation2 + $0xd8] sm:$0xff] }
  0x70   :  { %300 = vmatpush1.bf16.msra.mxu0 %v2047_v42  ;;  %511 = vmatpush1.bf16.msra.mxu1 %v2075_v43  ;;  %v142_v11 = vld [vmem:[#allocation2 + $0x300] sm:$0x33]  ;;  %v2058_v18 = vcombine.high %v136_v8, %v137_v10  ;;  %v354_v20 = vld [vmem:[#allocation2 + $0x288] sm:$0xff]  ;;  %v2086_v24 = vcombine.high %v352_v13, %v353_v14  ;;  %v2057_v25 = vcombine.low %v136_v8, %v137_v10  ;;  %v497_v33 = vsel %vm284_vm1, %v2091_v23, 0  ;;  %v555_v8 = vld [vmem:[#allocation2 + $0x110] sm:$0xff] }
  0x71   :  { %301 = vmatprep.subr.bf16.mxu0 %v2050_v44  ;;  %512 = vmatprep.subr.bf16.mxu1 %v2078_v46  ;;  %v138_v17 = vld [vmem:[#allocation2 + $0x280] sm:$0xff]  ;;  %v355_v21 = vld [vmem:[#allocation2 + $0x2a8] sm:$0xff]  ;;  %v2063_v22 = vcombine.low %v142_v11, %v142_v11  ;;  %v2085_v28 = vcombine.low %v352_v13, %v353_v14  ;;  %v2064_v43 = vcombine.high %v142_v11, %v142_v11  ;;  %v758_v44 = vld [vmem:[#allocation2 + $0x18] sm:$0xff] }
  0x72   :  { %v139_v19 = vld [vmem:[#allocation2 + $0x2a0] sm:$0xff]  ;;  %v356_v30 = vld [vmem:[#allocation2 + $0x2c8] sm:$0xff]  ;;  %v2088_v34 = vcombine.high %v354_v20, %v355_v21  ;;  %v2087_v36 = vcombine.low %v354_v20, %v355_v21  ;;  %v759_v46 = vld [vmem:[#allocation2 + $0x38] sm:$0xff] }
  0x73   :  { %v140_v26 = vld [vmem:[#allocation2 + $0x2c0] sm:$0xff]  ;;  %v2060_v29 = vcombine.high %v138_v17, %v139_v19  ;;  %v357_v31 = vld [vmem:[#allocation2 + $0x2e8] sm:$0xff]  ;;  %v286_v32 = vsel %vm284_vm1, %v2063_v22, 0  ;;  %v2059_v35 = vcombine.low %v138_v17, %v139_v19  ;;  %v2123_v59 = vcombine.low %v758_v44, %v759_v46  ;;  %v766_v12 = vld [vmem:[#allocation2 + $0x118] sm:$0xff] }
  0x74   :  { %302 = vmatpush1.bf16.msra.mxu0 %v2049_v52  ;;  %513 = vmatpush1.bf16.msra.mxu1 %v2077_v54  ;;  %v141_v27 = vld [vmem:[#allocation2 + $0x2e0] sm:$0xff]  ;;  %v2090_v38 = vcombine.high %v356_v30, %v357_v31  ;;  %v2089_v42 = vcombine.low %v356_v30, %v357_v31  ;;  %v761_v52 = vld [vmem:[#allocation2 + $0x78] sm:$0xff]  ;;  %v2124_v54 = vcombine.high %v758_v44, %v759_v46  ;;  %v558_v17 = vld [vmem:[#allocation2 + $0x170] sm:$0xff] }
  0x75   :  { %303 = vmatprep.subr.bf16.mxu0 %v2052_v55  ;;  %514 = vmatprep.subr.bf16.mxu1 %v2080_v56  ;;  %v2062_v37 = vcombine.high %v140_v26, %v141_v27  ;;  %v2061_v39 = vcombine.low %v140_v26, %v141_v27  ;;  %v2824_v55 = vpack.c.bf16 %v2808_v45, %v2808_v45  ;;  %v553_v45 = vld [vmem:[#allocation2 + $0xd0] sm:$0xff]  ;;  %v767_v13 = vld [vmem:[#allocation2 + $0x138] sm:$0xff] }
  0x76   :  { %v2095_v56 = vcombine.low %v547_v40, %v548_v41  ;;  %v2125_v2 = vcombine.low %v760_v51, %v761_v52  ;;  %v2102_v11 = vcombine.high %v553_v45, %v554_v1  ;;  %v768_v19 = vld [vmem:[#allocation2 + $0x158] sm:$0xff]  ;;  %v2132_v21 = vcombine.high %v766_v12, %v767_v13  ;;  %v559_v23 = vld [vmem:[#allocation2 + $0x190] sm:$0xff] }
  0x77   :  { %v769_v20 = vld [vmem:[#allocation2 + $0x178] sm:$0xff]  ;;  %v561_v31 = vld [vmem:[#allocation2 + $0x1d0] sm:$0xff] }
  0x78   :  { %304 = vmatpush1.bf16.msra.mxu0 %v2051_v61  ;;  %515 = vmatpush1.bf16.msra.mxu1 %v2079_v62  ;;  %v762_v61 = vld [vmem:[#allocation2 + $0x98] sm:$0xff]  ;;  %v564_v40 = vld [vmem:[#allocation2 + $0x230] sm:$0xff] }
  0x79   :  { %305 = vmatprep.subr.bf16.mxu0 %v2054_v63  ;;  %516 = vmatprep.subr.bf16.mxu1 %v2082_v0  ;;  %v763_v62 = vld [vmem:[#allocation2 + $0xb8] sm:$0xff]  ;;  %v2126_v63 = vcombine.high %v760_v51, %v761_v52  ;;  %v2097_v0 = vcombine.low %v549_v48, %v550_v49  ;;  %v565_v48 = vld [vmem:[#allocation2 + $0x250] sm:$0xff] }
  0x7a   :  { %v2127_v10 = vcombine.low %v762_v61, %v763_v62  ;;  %v770_v27 = vld [vmem:[#allocation2 + $0x198] sm:$0xff]  ;;  %v566_v49 = vld [vmem:[#allocation2 + $0x270] sm:$0xff] }
  0x7b   :  { %v775_v44 = vld [vmem:[#allocation2 + $0x238] sm:$0xff] }
  0x7c   :  { %306 = vmatpush1.bf16.msra.mxu0 %v2053_v5  ;;  %517 = vmatpush1.bf16.msra.mxu1 %v2081_v6  ;;  %v765_v5 = vld [vmem:[#allocation2 + $0xf8] sm:$0xff]  ;;  %v2128_v6 = vcombine.high %v762_v61, %v763_v62  ;;  %v2114_v61 = vcombine.high %v565_v48, %v566_v49 }
  0x7d   :  { %307 = vmatprep.subr.bf16.mxu0 %v2056_v7  ;;  %518 = vmatprep.subr.bf16.mxu1 %v2084_v9  ;;  %v2099_v7 = vcombine.low %v551_v57, %v552_v58  ;;  %v556_v9 = vld [vmem:[#allocation2 + $0x130] sm:$0xff]  ;;  %v2130_v14 = vcombine.high %v764_v4, %v765_v5  ;;  %v776_v52 = vld [vmem:[#allocation2 + $0x258] sm:$0xff] }
  0x7e   :  { %v2103_v22 = vcombine.low %v555_v8, %v556_v9  ;;  %v567_v58 = vld [vmem:[#allocation2 + $0x290] sm:$0xff]  ;;  %v778_v62 = vld [vmem:[#allocation2 + $0x298] sm:$0xff] }
  0x80   :  { %308 = vmatpush1.bf16.msra.mxu0 %v2055_v15  ;;  %519 = vmatpush1.bf16.msra.mxu1 %v2083_v16  ;;  %v2101_v15 = vcombine.low %v553_v45, %v554_v1  ;;  %v557_v16 = vld [vmem:[#allocation2 + $0x150] sm:$0xff]  ;;  %v2113_v45 = vcombine.low %v565_v48, %v566_v49  ;;  %v2470_v48 = vld [vmem:[#allocation7 + $0xc4] ss:$16 sps:$4 sm:$0xff]   ;;  %v2471_v49 = vld [vmem:[#allocation7 + $0x1e0] ss:$16 sps:$4 sm:$0xff]  }
  0x81   :  { %309 = vmatprep.subr.bf16.mxu0 %v2058_v18  ;;  %520 = vmatprep.subr.bf16.mxu1 %v2086_v24  ;;  %v2129_v18 = vcombine.low %v764_v4, %v765_v5  ;;  %v560_v24 = vld [vmem:[#allocation2 + $0x1b0] sm:$0xff]  ;;  %v2106_v26 = vcombine.high %v557_v16, %v558_v17  ;;  %v2105_v30 = vcombine.low %v557_v16, %v558_v17  ;;  %v780_v5 = vld [vmem:[#allocation2 + $0x2d8] sm:$0xff] }
  0x82   :  { %v569_v1 = vld [vmem:[#allocation2 + $0x2d0] sm:$0xff] }
  0x84   :  { %310 = vmatpush1.bf16.msra.mxu0 %v2057_v25  ;;  %521 = vmatpush1.bf16.msra.mxu1 %v2085_v28  ;;  %v2131_v25 = vcombine.low %v766_v12, %v767_v13  ;;  %v771_v28 = vld [vmem:[#allocation2 + $0x1b8] sm:$0xff]  ;;  %v571_v12 = vld [vmem:[#allocation2 + $0x310] sm:$0x33] }
  0x85   :  { %311 = vmatprep.subr.bf16.mxu0 %v2060_v29  ;;  %522 = vmatprep.subr.bf16.mxu1 %v2088_v34  ;;  %v2134_v29 = vcombine.high %v768_v19, %v769_v20  ;;  %v2108_v34 = vcombine.high %v559_v23, %v560_v24  ;;  %v2135_v41 = vcombine.low %v770_v27, %v771_v28  ;;  %v782_v13 = vld [vmem:[#allocation2 + $0x318] sm:$0x33] }
  0x86   :  { %v2120_v16 = vcombine.high %v571_v12, %v571_v12  ;;  %v2119_v17 = vcombine.low %v571_v12, %v571_v12 }
  0x88   :  { %312 = vmatpush1.bf16.msra.mxu0 %v2059_v35  ;;  %523 = vmatpush1.bf16.msra.mxu1 %v2087_v36  ;;  %v772_v35 = vld [vmem:[#allocation2 + $0x1d8] sm:$0xff] }
  0x89   :  { %313 = vmatprep.subr.bf16.mxu0 %v2062_v37  ;;  %524 = vmatprep.subr.bf16.mxu1 %v2090_v38  ;;  %v773_v36 = vld [vmem:[#allocation2 + $0x1f8] sm:$0xff]  ;;  %v2136_v37 = vcombine.high %v770_v27, %v771_v28  ;;  %v2107_v38 = vcombine.low %v559_v23, %v560_v24 }
  0x8a   :  { %v2138_v46 = vcombine.high %v772_v35, %v773_v36  ;;  %v2445_v23 = vld [vmem:[#allocation7] ss:$16 sps:$4 sm:$0xff]   ;;  %v2446_v24 = vld [vmem:[#allocation7 + $0x4] ss:$16 sps:$4 sm:$0xff]  }
  0x8b   :  { %v2449_v27 = vld [vmem:[#allocation7 + $0x20] ss:$16 sps:$4 sm:$0xff]   ;;  %v2450_v28 = vld [vmem:[#allocation7 + $0x24] ss:$16 sps:$4 sm:$0xff]  }
  0x8c   :  { %314 = vmatpush1.bf16.msra.mxu0 %v2061_v39  ;;  %525 = vmatpush1.bf16.msra.mxu1 %v2089_v42  ;;  %v563_v39 = vld [vmem:[#allocation2 + $0x210] sm:$0xff] }
  0x8d   :  { %2065 = vmatprep.subr.msk.bf16.mxu0 %vm284_vm1, %v2064_v43  ;;  %2093 = vmatprep.subr.msk.bf16.mxu1 %vm284_vm1, %v2092_v47  ;;  %v774_v43 = vld [vmem:[#allocation2 + $0x218] sm:$0xff]  ;;  %v2112_v51 = vcombine.high %v563_v39, %v564_v40  ;;  %v2111_v57 = vcombine.low %v563_v39, %v564_v40 }
  0x8e   :  { %v2462_v39 = vld [vmem:[#allocation7 + $0x84] ss:$16 sps:$4 sm:$0xff]   ;;  %v2463_v40 = vld [vmem:[#allocation7 + $0x1a0] ss:$16 sps:$4 sm:$0xff]  }
  0x90   :  { %316 = vmatpush1.bf16.msra.mxu0 %v286_v32  ;;  %527 = vmatpush1.bf16.msra.mxu1 %v497_v33  ;;  %v562_v32 = vld [vmem:[#allocation2 + $0x1f0] sm:$0xff]  ;;  %v2133_v33 = vcombine.low %v768_v19, %v769_v20  ;;  %v710_v19 = vsel %vm284_vm1, %v2119_v17, 0 }
  0x91   :  { %715 = vmatprep.subr.bf16.mxu0 %v2096_v50  ;;  %926 = vmatprep.subr.bf16.mxu1 %v2124_v54  ;;  %v2110_v42 = vcombine.high %v561_v31, %v562_v32  ;;  %v2109_v47 = vcombine.low %v561_v31, %v562_v32  ;;  %v2137_v50 = vcombine.low %v772_v35, %v773_v36  ;;  %v777_v54 = vld [vmem:[#allocation2 + $0x278] sm:$0xff] }
  0x92   :  { %v2453_v31 = vld [vmem:[#allocation7 + $0x40] ss:$16 sps:$4 sm:$0xff]   ;;  %v2458_v35 = vld [vmem:[#allocation7 + $0x64] ss:$16 sps:$4 sm:$0xff]  }
  0x93   :  { %324 = vmatmul.mubr.bf16.vlgmr.msra.gmra.mrb[0].mxu0 %v2824_v55  ;;  %535 = vmatmul.mubr.bf16.vlgmr.msra.gmra.mrb[0].mxu1 %v2824_v55  ;;  %v2455_v32 = vld [vmem:[#allocation7 + $0x160] ss:$16 sps:$4 sm:$0xff]  }
  0x94   :  { %716 = vmatpush1.bf16.msra.mxu0 %v2095_v56  ;;  %927 = vmatpush1.bf16.msra.mxu1 %v2123_v59  ;;  %v2140_v56 = vcombine.high %v774_v43, %v775_v44  ;;  %v568_v59 = vld [vmem:[#allocation2 + $0x2b0] sm:$0xff]  ;;  %v2459_v36 = vld [vmem:[#allocation7 + $0x180] ss:$16 sps:$4 sm:$0xff]  }
  0x95   :  { %717 = vmatprep.subr.bf16.mxu0 %v2098_v60  ;;  %928 = vmatprep.subr.bf16.mxu1 %v2126_v63  ;;  %v2139_v60 = vcombine.low %v774_v43, %v775_v44  ;;  %v779_v63 = vld [vmem:[#allocation2 + $0x2b8] sm:$0xff]  ;;  %v2116_v4 = vcombine.high %v567_v58, %v568_v59 }
  0x96   :  { %2122 = vmatprep.mubr.msk.bf16.mxu0 %vm280_vm0, %v2812_v53  ;;  %2150 = vmatprep.mubr.msk.bf16.mxu1 %vm280_vm0, %v2812_v53  ;;  %v2104_v53 = vcombine.high %v555_v8, %v556_v9  ;;  %v2115_v8 = vcombine.low %v567_v58, %v568_v59  ;;  %v2143_v9 = vcombine.low %v778_v62, %v779_v63  ;;  %v2466_v43 = vld [vmem:[#allocation7 + $0xa4] ss:$16 sps:$4 sm:$0xff]   ;;  %v2467_v44 = vld [vmem:[#allocation7 + $0x1c0] ss:$16 sps:$4 sm:$0xff]  }
  0x98   :  { %718 = vmatpush1.bf16.msra.mxu0 %v2097_v0  ;;  %929 = vmatpush1.bf16.msra.mxu1 %v2125_v2  ;;  %v2142_v0 = vcombine.high %v776_v52, %v777_v54  ;;  %v570_v2 = vld [vmem:[#allocation2 + $0x2f0] sm:$0xff] }
  0x99   :  { %719 = vmatprep.subr.bf16.mxu0 %v2100_v3  ;;  %930 = vmatprep.subr.bf16.mxu1 %v2128_v6  ;;  %v2141_v3 = vcombine.low %v776_v52, %v777_v54  ;;  %v781_v6 = vld [vmem:[#allocation2 + $0x2f8] sm:$0xff]  ;;  %v2475_v54 = vld [vmem:[#allocation7 + $0x108] ss:$16 sps:$4 sm:$0xff]  }
  0x9a   :  { %v2474_v52 = vld [vmem:[#allocation7 + $0xe4] ss:$16 sps:$4 sm:$0xff]  }
  0x9c   :  { %720 = vmatpush1.bf16.msra.mxu0 %v2099_v7  ;;  %931 = vmatpush1.bf16.msra.mxu1 %v2127_v10  ;;  %v2144_v7 = vcombine.high %v778_v62, %v779_v63  ;;  %v2118_v10 = vcombine.high %v569_v1, %v570_v2  ;;  %v359_v62 = vld [vmem:[#allocation5 + $0x2] sm:$0x3] }
  0x9d   :  { %721 = vmatprep.subr.bf16.mxu0 %v2102_v11  ;;  %932 = vmatprep.subr.bf16.mxu1 %v2130_v14  ;;  %v2146_v11 = vcombine.high %v780_v5, %v781_v6  ;;  %v2117_v14 = vcombine.low %v569_v1, %v570_v2 }
  0xa0   :  { %722 = vmatpush1.bf16.msra.mxu0 %v2101_v15  ;;  %933 = vmatpush1.bf16.msra.mxu1 %v2129_v18  ;;  %v2145_v15 = vcombine.low %v780_v5, %v781_v6  ;;  %v2148_v18 = vcombine.high %v782_v13, %v782_v13 }
  0xa1   :  { %723 = vmatprep.subr.bf16.mxu0 %v2104_v53  ;;  %934 = vmatprep.subr.bf16.mxu1 %v2132_v21  ;;  %v2147_v53 = vcombine.low %v782_v13, %v782_v13  ;;  %v2443_v21 = vld [vmem:[#allocation7 + $0x100] ss:$16 sps:$4 sm:$0xff]  }
  0xa3   :  { %v921_v20 = vsel %vm284_vm1, %v2147_v53, 0 }
  0xa4   :  { %724 = vmatpush1.bf16.msra.mxu0 %v2103_v22  ;;  %935 = vmatpush1.bf16.msra.mxu1 %v2131_v25  ;;  %v2444_v22 = vld [vmem:[#allocation7 + $0x104] ss:$16 sps:$4 sm:$0xff]   ;;  %v2447_v25 = vld [vmem:[#allocation7 + $0x120] ss:$16 sps:$4 sm:$0xff]  }
  0xa5   :  { %725 = vmatprep.subr.bf16.mxu0 %v2106_v26  ;;  %936 = vmatprep.subr.bf16.mxu1 %v2134_v29  ;;  %v2448_v26 = vld [vmem:[#allocation7 + $0x124] ss:$16 sps:$4 sm:$0xff]   ;;  %v2451_v29 = vld [vmem:[#allocation7 + $0x140] ss:$16 sps:$4 sm:$0xff]  }
  0xa8   :  { %726 = vmatpush1.bf16.msra.mxu0 %v2105_v30  ;;  %937 = vmatpush1.bf16.msra.mxu1 %v2133_v33  ;;  %v2452_v30 = vld [vmem:[#allocation7 + $0x144] ss:$16 sps:$4 sm:$0xff]  }
  0xa9   :  { %727 = vmatprep.subr.bf16.mxu0 %v2108_v34  ;;  %938 = vmatprep.subr.bf16.mxu1 %v2136_v37  ;;  %v2456_v33 = vld [vmem:[#allocation7 + $0x164] ss:$16 sps:$4 sm:$0xff]   ;;  %v2457_v34 = vld [vmem:[#allocation7 + $0x60] ss:$16 sps:$4 sm:$0xff]  }
  0xaa   :  { %v2460_v37 = vld [vmem:[#allocation7 + $0x184] ss:$16 sps:$4 sm:$0xff]  }
  0xac   :  { %728 = vmatpush1.bf16.msra.mxu0 %v2107_v38  ;;  %939 = vmatpush1.bf16.msra.mxu1 %v2135_v41  ;;  %v2461_v38 = vld [vmem:[#allocation7 + $0x80] ss:$16 sps:$4 sm:$0xff]   ;;  %v2464_v41 = vld [vmem:[#allocation7 + $0x1a4] ss:$16 sps:$4 sm:$0xff]  }
  0xad   :  { %729 = vmatprep.subr.bf16.mxu0 %v2110_v42  ;;  %940 = vmatprep.subr.bf16.mxu1 %v2138_v46  ;;  %v2465_v42 = vld [vmem:[#allocation7 + $0xa0] ss:$16 sps:$4 sm:$0xff]   ;;  %v2468_v46 = vld [vmem:[#allocation7 + $0x1c4] ss:$16 sps:$4 sm:$0xff]  }
  0xb0   :  { %730 = vmatpush1.bf16.msra.mxu0 %v2109_v47  ;;  %941 = vmatpush1.bf16.msra.mxu1 %v2137_v50  ;;  %v2469_v47 = vld [vmem:[#allocation7 + $0xc0] ss:$16 sps:$4 sm:$0xff]   ;;  %v2472_v50 = vld [vmem:[#allocation7 + $0x1e4] ss:$16 sps:$4 sm:$0xff]  }
  0xb1   :  { %731 = vmatprep.subr.bf16.mxu0 %v2112_v51  ;;  %942 = vmatprep.subr.bf16.mxu1 %v2140_v56  ;;  %v2473_v51 = vld [vmem:[#allocation7 + $0xe0] ss:$16 sps:$4 sm:$0xff]   ;;  %v2476_v56 = vld [vmem:[#allocation7 + $0x10c] ss:$16 sps:$4 sm:$0xff]  }
  0xb4   :  { %732 = vmatpush1.bf16.msra.mxu0 %v2111_v57  ;;  %943 = vmatpush1.bf16.msra.mxu1 %v2139_v60  ;;  %v145_v57 = vlaneseq  ;;  %v143_v60 = vld [vmem:[#allocation5] sm:$0x3] }
  0xb5   :  { %733 = vmatprep.subr.bf16.mxu0 %v2114_v61  ;;  %944 = vmatprep.subr.bf16.mxu1 %v2142_v0 }
  0xb6   :  { %v146_v58 = vshrl.u32 %v145_v57, 7  ;;  %v2485_v57 = vld [vmem:[#allocation7 + $0x48] ss:$16 sps:$4 sm:$0xff]  }
  0xb8   :  { %734 = vmatpush1.bf16.msra.mxu0 %v2113_v45  ;;  %945 = vmatpush1.bf16.msra.mxu1 %v2141_v3  ;;  %v147_v59 = vsub.s32 0, %v146_v58  ;;  %v151_v61 = vsub.s32 1, %v146_v58  ;;  %v2486_v58 = vld [vmem:[#allocation7 + $0x4c] ss:$16 sps:$4 sm:$0xff]  }
  0xb9   :  { %735 = vmatprep.subr.bf16.mxu0 %v2116_v4  ;;  %946 = vmatprep.subr.bf16.mxu1 %v2144_v7 }
  0xba   :  { %v148_v63 = vrot.slane %v143_v60, %v147_v59  ;;  %v364_v0 = vrot.slane %v359_v62, %v147_v59  ;;  %v152_v45 = vrot.slane %v143_v60, %v151_v61  ;;  %v368_v1 = vrot.slane %v359_v62, %v151_v61  ;;  %v2488_v60 = vld [vmem:[#allocation7 + $0x16c] ss:$16 sps:$4 sm:$0xff]  }
  0xbb   :  { %v2490_v62 = vld [vmem:[#allocation7 + $0x6c] ss:$16 sps:$4 sm:$0xff]  }
  0xbc   :  { %736 = vmatpush1.bf16.msra.mxu0 %v2115_v8  ;;  %947 = vmatpush1.bf16.msra.mxu1 %v2143_v9 }
  0xbd   :  { %737 = vmatprep.subr.bf16.mxu0 %v2118_v10  ;;  %948 = vmatprep.subr.bf16.mxu1 %v2146_v11 }
  0xc0   :  { %738 = vmatpush1.bf16.msra.mxu0 %v2117_v14  ;;  %949 = vmatpush1.bf16.msra.mxu1 %v2145_v15 }
  0xc1   :  { %2121 = vmatprep.subr.msk.bf16.mxu0 %vm284_vm1, %v2120_v16  ;;  %2149 = vmatprep.subr.msk.bf16.mxu1 %vm284_vm1, %v2148_v18 }
  0xc4   :  { %740 = vmatpush1.bf16.msra.mxu0 %v710_v19  ;;  %951 = vmatpush1.bf16.msra.mxu1 %v921_v20  ;;  %v572_v19 = vld [vmem:[#allocation5 + $0x4] sm:$0x3]  ;;  %v783_v20 = vld [vmem:[#allocation5 + $0x6] sm:$0x3] }
  0xc5   :  { %2246 = vmatprep.subr.bf16.mxu0 %v2443_v21  ;;  %2268 = vmatprep.subr.bf16.mxu1 %v2444_v22  ;;  %v577_v21 = vrot.slane %v572_v19, %v147_v59  ;;  %v788_v22 = vrot.slane %v783_v20, %v147_v59  ;;  %v2487_v59 = vld [vmem:[#allocation7 + $0x168] ss:$16 sps:$4 sm:$0xff]  }
  0xc7   :  { %748 = vmatmul.mubr.bf16.vlgmr.msra.gmra.mrb[4].mxu0 %v2824_v55  ;;  %959 = vmatmul.mubr.bf16.vlgmr.msra.gmra.mrb[4].mxu1 %v2824_v55  ;;  %v2454_v55 = vld [vmem:[#allocation7 + $0x44] ss:$16 sps:$4 sm:$0xff]  }
  0xc8   :  { %2247 = vmatpush3.bf16.msra.mxu0 %v2445_v23  ;;  %2269 = vmatpush3.bf16.msra.mxu1 %v2446_v24  ;;  %v581_v23 = vrot.slane %v572_v19, %v151_v61  ;;  %v792_v24 = vrot.slane %v783_v20, %v151_v61  ;;  %v2489_v61 = vld [vmem:[#allocation7 + $0x68] ss:$16 sps:$4 sm:$0xff]   ;;  %v2512_v19 = vld [vmem:[%s2948_s5 + $0x28] sm:$0xff]  }
  0xc9   :  { %2248 = vmatprep.subr.bf16.mxu0 %v2447_v25  ;;  %2270 = vmatprep.subr.bf16.mxu1 %v2448_v26  ;;  %v2513_v20 = vld [vmem:[%s2948_s5 + $0x30] sm:$0xff]  }
  0xcc   :  { %2249 = vmatpush3.bf16.msra.mxu0 %v2449_v27  ;;  %2271 = vmatpush3.bf16.msra.mxu1 %v2450_v28 }
  0xcd   :  { %2250 = vmatprep.subr.bf16.mxu0 %v2451_v29  ;;  %2272 = vmatprep.subr.bf16.mxu1 %v2452_v30 }
  0xd0   :  { %2251 = vmatpush3.bf16.msra.mxu0 %v2453_v31  ;;  %2273 = vmatpush3.bf16.msra.mxu1 %v2454_v55 }
  0xd1   :  { %2252 = vmatprep.subr.bf16.mxu0 %v2455_v32  ;;  %2274 = vmatprep.subr.bf16.mxu1 %v2456_v33 }
  0xd4   :  { %2253 = vmatpush3.bf16.msra.mxu0 %v2457_v34  ;;  %2275 = vmatpush3.bf16.msra.mxu1 %v2458_v35 }
  0xd5   :  { %2254 = vmatprep.subr.bf16.mxu0 %v2459_v36  ;;  %2276 = vmatprep.subr.bf16.mxu1 %v2460_v37 }
  0xd8   :  { %2255 = vmatpush3.bf16.msra.mxu0 %v2461_v38  ;;  %2277 = vmatpush3.bf16.msra.mxu1 %v2462_v39 }
  0xd9   :  { %2256 = vmatprep.subr.bf16.mxu0 %v2463_v40  ;;  %2278 = vmatprep.subr.bf16.mxu1 %v2464_v41 }
  0xdc   :  { %2257 = vmatpush3.bf16.msra.mxu0 %v2465_v42  ;;  %2279 = vmatpush3.bf16.msra.mxu1 %v2466_v43 }
  0xdd   :  { %2258 = vmatprep.subr.bf16.mxu0 %v2467_v44  ;;  %2280 = vmatprep.subr.bf16.mxu1 %v2468_v46  ;;  %v2477_v46 = vld [vmem:[#allocation7 + $0x8] ss:$16 sps:$4 sm:$0xff]  }
  0xe0   :  { %2259 = vmatpush3.bf16.msra.mxu0 %v2469_v47  ;;  %2281 = vmatpush3.bf16.msra.mxu1 %v2470_v48  ;;  %v2478_v47 = vld [vmem:[#allocation7 + $0xc] ss:$16 sps:$4 sm:$0xff]  }
  0xe1   :  { %2260 = vmatprep.subr.bf16.mxu0 %v2471_v49  ;;  %2282 = vmatprep.subr.bf16.mxu1 %v2472_v50  ;;  %v2479_v49 = vld [vmem:[#allocation7 + $0x128] ss:$16 sps:$4 sm:$0xff]   ;;  %v2480_v50 = vld [vmem:[#allocation7 + $0x12c] ss:$16 sps:$4 sm:$0xff]  }
  0xe4   :  { %2261 = vmatpush3.bf16.msra.mxu0 %v2473_v51  ;;  %2283 = vmatpush3.bf16.msra.mxu1 %v2474_v52  ;;  %v2481_v51 = vld [vmem:[#allocation7 + $0x28] ss:$16 sps:$4 sm:$0xff]   ;;  %v2482_v52 = vld [vmem:[#allocation7 + $0x2c] ss:$16 sps:$4 sm:$0xff]  }
  0xe5   :  { %2290 = vmatprep.subr.bf16.mxu0 %v2475_v54  ;;  %2312 = vmatprep.subr.bf16.mxu1 %v2476_v56  ;;  %v2483_v54 = vld [vmem:[#allocation7 + $0x148] ss:$16 sps:$4 sm:$0xff]   ;;  %v2484_v56 = vld [vmem:[#allocation7 + $0x14c] ss:$16 sps:$4 sm:$0xff]  }
 0x166   :  { %v325_v2 = vpop.f32.mrb[0].mxu0  ;;  %v536_v4 = vpop.f32.mrb[0].mxu1 }
 0x167   :  { %v326_v3 = vadd.f32 %v325_v2, %v148_v63  ;;  %v327_v5 = vpop.f32.mrb[1].mxu0  ;;  %v537_v6 = vadd.f32 %v536_v4, %v364_v0  ;;  %v538_v8 = vpop.f32.mrb[1].mxu1  ;;  %v2491_v63 = vld [vmem:[#allocation7 + $0x188] ss:$16 sps:$4 sm:$0xff]   ;;  %v2492_v0 = vld [vmem:[#allocation7 + $0x18c] ss:$16 sps:$4 sm:$0xff]  }
 0x168   :  { %v328_v7 = vadd.f32 %v327_v5, %v152_v45  ;;  %v329_v9 = vpop.f32.mrb[2].mxu0  ;;  %v539_v11 = vadd.f32 %v538_v8, %v368_v1  ;;  %v540_v12 = vpop.f32.mrb[2].mxu1  ;;  %v2493_v45 = vld [vmem:[#allocation7 + $0x88] ss:$16 sps:$4 sm:$0xff]   ;;  %v2494_v1 = vld [vmem:[#allocation7 + $0x8c] ss:$16 sps:$4 sm:$0xff]  }
 0x169   :  { %v332_v10 = vmax.f32 %v326_v3, 0.0  ;;  %v330_v13 = vpop.f32.mrb[3].mxu0  ;;  %v543_v14 = vmax.f32 %v537_v6, 0.0  ;;  %v541_v16 = vpop.f32.mrb[3].mxu1  ;;  %v2495_v2 = vld [vmem:[#allocation7 + $0x1a8] ss:$16 sps:$4 sm:$0xff]  }
 0x16a   :  { %v333_v15 = vmax.f32 %v328_v7, 0.0  ;;  %v544_v17 = vmax.f32 %v539_v11, 0.0  ;;  %v2496_v3 = vld [vmem:[#allocation7 + $0x1ac] ss:$16 sps:$4 sm:$0xff]   ;;  %v2497_v4 = vld [vmem:[#allocation7 + $0xa8] ss:$16 sps:$4 sm:$0xff]  }
 0x16b   :  { %v545_v18 = vmax.f32 %v332_v10, %v543_v14  ;;  %v2498_v5 = vld [vmem:[#allocation7 + $0xac] ss:$16 sps:$4 sm:$0xff]   ;;  %v2499_v6 = vld [vmem:[#allocation7 + $0x1c8] ss:$16 sps:$4 sm:$0xff]   ;;  %v2508_v16 = vld [vmem:[%s2948_s5 + $0x8] sm:$0xff]  }
 0x16c   :  { %v546_v53 = vmax.f32 %v333_v15, %v544_v17  ;;  %v2500_v7 = vld [vmem:[#allocation7 + $0x1cc] ss:$16 sps:$4 sm:$0xff]   ;;  %v2501_v8 = vld [vmem:[#allocation7 + $0xc8] ss:$16 sps:$4 sm:$0xff]   ;;  %v2682_v15 = vmov 0.0  }
 0x16d   :  { %v2502_v9 = vld [vmem:[#allocation7 + $0xcc] ss:$16 sps:$4 sm:$0xff]   ;;  %v2503_v10 = vld [vmem:[#allocation7 + $0x1e8] ss:$16 sps:$4 sm:$0xff]  }
 0x16e   :  { %v2504_v11 = vld [vmem:[#allocation7 + $0x1ec] ss:$16 sps:$4 sm:$0xff]   ;;  %v2505_v12 = vld [vmem:[#allocation7 + $0xe8] ss:$16 sps:$4 sm:$0xff]  }
 0x16f   :  { %v2506_v13 = vld [vmem:[#allocation7 + $0xec] ss:$16 sps:$4 sm:$0xff]  }
 0x170   :  { %v2507_v14 = vld [vmem:[%s2948_s5] sm:$0xff]   ;;  %v2509_v17 = vld [vmem:[%s2948_s5 + $0x10] sm:$0xff]  }
 0x19a   :  { %v749_v25 = vpop.f32.mrb[4].mxu0  ;;  %v960_v27 = vpop.f32.mrb[4].mxu1 }
 0x19b   :  { %v750_v26 = vadd.f32 %v749_v25, %v577_v21  ;;  %v751_v28 = vpop.f32.mrb[5].mxu0  ;;  %v961_v29 = vadd.f32 %v960_v27, %v788_v22  ;;  %v962_v31 = vpop.f32.mrb[5].mxu1  ;;  %v2514_v21 = vld [vmem:[%s2948_s5 + $0x38] sm:$0xff]   ;;  %v2515_v22 = vld [vmem:[#allocation10] sm:$0xff]   ;;  %v2518_v25 = vld [vmem:[#allocation10 + $0x18] sm:$0xff]  }
 0x19c   :  { %v752_v30 = vadd.f32 %v751_v28, %v581_v23  ;;  %v753_v55 = vpop.f32.mrb[6].mxu0  ;;  %v963_v33 = vadd.f32 %v962_v31, %v792_v24  ;;  %v964_v34 = vpop.f32.mrb[6].mxu1  ;;  %v2516_v23 = vld [vmem:[#allocation10 + $0x8] sm:$0xff]   ;;  %v2517_v24 = vld [vmem:[#allocation10 + $0x10] sm:$0xff]  }
 0x19d   :  { %v756_v32 = vmax.f32 %v750_v26, 0.0  ;;  %v754_v35 = vpop.f32.mrb[7].mxu0  ;;  %v967_v36 = vmax.f32 %v961_v29, 0.0  ;;  %v965_v38 = vpop.f32.mrb[7].mxu1  ;;  %v2519_v26 = vld [vmem:[#allocation10 + $0x20] sm:$0xff]   ;;  %v2520_v27 = vld [vmem:[#allocation10 + $0x28] sm:$0xff]  }
 0x19e   :  { %v757_v37 = vmax.f32 %v752_v30, 0.0  ;;  %v968_v39 = vmax.f32 %v963_v33, 0.0  ;;  %v2151_v30 = vld [vmem:[#allocation8] ss:$0 sm:$0xff]  ;;  %v2168_v55 = vld [vmem:[#allocation8 + $0x1] ss:$0 sm:$0xff] }
 0x19f   :  { %v969_v40 = vmax.f32 %v756_v32, %v967_v36 }
 0x1a0   :  { %v970_v41 = vmax.f32 %v757_v37, %v968_v39 }
 0x1a1   :  { %v971_v42 = vmax.f32 %v545_v18, %v969_v40  ;;  %v2510_v18 = vld [vmem:[%s2948_s5 + $0x18] sm:$0xff]  }
 0x1a2   :  { %v972_v43 = vmax.f32 %v546_v53, %v970_v41  ;;  %v2511_v53 = vld [vmem:[%s2948_s5 + $0x20] sm:$0xff]  }
 0x1a3   :  { %v2838_v48 = vpack.c.bf16 %v971_v42, %v971_v42 }
 0x1a4   :  { %v974_v44 = vpack.c.bf16 %v972_v43, %v972_v43 }
 0x1a6   :  { %1142 = vmatprep.mubr.bf16.mxu0 %v974_v44  ;;  %1318 = vmatprep.mubr.bf16.mxu1 %v974_v44 }
 0x1a7   :  { %1143 = vmatmul.mubr.bf16.vlgmr.msra.gmra.mrb[8].mxu0 %v2838_v48  ;;  %1319 = vmatmul.mubr.bf16.vlgmr.msra.gmra.mrb[8].mxu1 %v2838_v48 }
 0x1a8   :  { %2291 = vmatpush3.bf16.msra.mxu0 %v2477_v46  ;;  %2313 = vmatpush3.bf16.msra.mxu1 %v2478_v47  ;;  %v2185_v47 = vld [vmem:[#allocation8 + $0x2] ss:$0 sm:$0xff] }
 0x1a9   :  { %1495 = vmatprep.mubr.bf16.mxu0 %v974_v44  ;;  %1671 = vmatprep.mubr.bf16.mxu1 %v974_v44 }
 0x1aa   :  { %2292 = vmatprep.subr.bf16.mxu0 %v2479_v49  ;;  %2314 = vmatprep.subr.bf16.mxu1 %v2480_v50  ;;  %v2202_v49 = vld [vmem:[#allocation8 + $0x3] ss:$0 sm:$0xff] }
 0x1ac   :  { %2293 = vmatpush3.bf16.msra.mxu0 %v2481_v51  ;;  %2315 = vmatpush3.bf16.msra.mxu1 %v2482_v52 }
 0x1ad   :  { %2294 = vmatprep.subr.bf16.mxu0 %v2483_v54  ;;  %2316 = vmatprep.subr.bf16.mxu1 %v2484_v56 }
 0x1b0   :  { %2295 = vmatpush3.bf16.msra.mxu0 %v2485_v57  ;;  %2317 = vmatpush3.bf16.msra.mxu1 %v2486_v58 }
 0x1b1   :  { %2296 = vmatprep.subr.bf16.mxu0 %v2487_v59  ;;  %2318 = vmatprep.subr.bf16.mxu1 %v2488_v60 }
 0x1b4   :  { %2297 = vmatpush3.bf16.msra.mxu0 %v2489_v61  ;;  %2319 = vmatpush3.bf16.msra.mxu1 %v2490_v62 }
 0x1b5   :  { %2298 = vmatprep.subr.bf16.mxu0 %v2491_v63  ;;  %2320 = vmatprep.subr.bf16.mxu1 %v2492_v0 }
 0x1b8   :  { %2299 = vmatpush3.bf16.msra.mxu0 %v2493_v45  ;;  %2321 = vmatpush3.bf16.msra.mxu1 %v2494_v1  ;;  %v2521_v1 = vld [vmem:[#allocation10 + $0x30] sm:$0xff]  }
 0x1b9   :  { %2300 = vmatprep.subr.bf16.mxu0 %v2495_v2  ;;  %2322 = vmatprep.subr.bf16.mxu1 %v2496_v3  ;;  %v2522_v2 = vld [vmem:[#allocation10 + $0x38] sm:$0xff]  }
 0x1ba   :  { %v2523_v3 = vld [vmem:[%s2952_s9] sm:$0xff]  }
 0x1bc   :  { %2301 = vmatpush3.bf16.msra.mxu0 %v2497_v4  ;;  %2323 = vmatpush3.bf16.msra.mxu1 %v2498_v5  ;;  %v2524_v4 = vld [vmem:[%s2952_s9 + $0x8] sm:$0xff]   ;;  %v2525_v5 = vld [vmem:[%s2952_s9 + $0x10] sm:$0xff]  }
 0x1bd   :  { %2302 = vmatprep.subr.bf16.mxu0 %v2499_v6  ;;  %2324 = vmatprep.subr.bf16.mxu1 %v2500_v7  ;;  %v2526_v6 = vld [vmem:[%s2952_s9 + $0x18] sm:$0xff]   ;;  %v2527_v7 = vld [vmem:[%s2952_s9 + $0x20] sm:$0xff]  }
 0x1c0   :  { %2303 = vmatpush3.bf16.msra.mxu0 %v2501_v8  ;;  %2325 = vmatpush3.bf16.msra.mxu1 %v2502_v9  ;;  %v2528_v8 = vld [vmem:[%s2952_s9 + $0x28] sm:$0xff]   ;;  %v2219_v9 = vld [vmem:[%s2949_s6] ss:$0 sm:$0xff] }
 0x1c1   :  { %2304 = vmatprep.subr.bf16.mxu0 %v2503_v10  ;;  %2326 = vmatprep.subr.bf16.mxu1 %v2504_v11 }
 0x1c4   :  { %2305 = vmatpush3.bf16.msra.mxu0 %v2505_v12  ;;  %2327 = vmatpush3.bf16.msra.mxu1 %v2506_v13 }
 0x1c5   :  { %2361 = vmatprep.subr.bf16.mxu0 %v2682_v15  ;;  %2381 = vmatprep.subr.bf16.mxu1 %v2682_v15 }
 0x1c7   :  { %1496 = vmatmul.mubr.bf16.vlgmr.msra.gmra.mrb[12].mxu0 %v2838_v48  ;;  %1672 = vmatmul.mubr.bf16.vlgmr.msra.gmra.mrb[12].mxu1 %v2838_v48 }
 0x1c8   :  { %2362 = vmatpush3.bf16.msra.mxu0 %v2507_v14  ;;  %2377 = vmatprep.mubr.msk.bf16.mxu0 %vm2683_vm2, %v2682_v15 }
 0x1c9   :  { %2363 = vmatprep.subr.bf16.mxu0 %v2682_v15  ;;  %2397 = vmatprep.mubr.msk.bf16.mxu1 %vm2683_vm2, %v2682_v15 }
 0x1ca   :  { %2382 = vmatpush3.bf16.msra.mxu1 %v2515_v22 }
 0x1cb   :  { %2383 = vmatprep.subr.bf16.mxu1 %v2682_v15 }
 0x1cc   :  { %2364 = vmatpush3.bf16.msra.mxu0 %v2508_v16 }
 0x1cd   :  { %2365 = vmatprep.subr.bf16.mxu0 %v2682_v15 }
 0x1ce   :  { %2384 = vmatpush3.bf16.msra.mxu1 %v2516_v23 }
 0x1cf   :  { %2385 = vmatprep.subr.bf16.mxu1 %v2682_v15 }
 0x1d0   :  { %2366 = vmatpush3.bf16.msra.mxu0 %v2509_v17 }
 0x1d1   :  { %2367 = vmatprep.subr.bf16.mxu0 %v2682_v15 }
 0x1d2   :  { %2386 = vmatpush3.bf16.msra.mxu1 %v2517_v24 }
 0x1d3   :  { %2387 = vmatprep.subr.bf16.mxu1 %v2682_v15 }
 0x1d4   :  { %2368 = vmatpush3.bf16.msra.mxu0 %v2510_v18  ;;  %v2529_v18 = vld [vmem:[%s2952_s9 + $0x30] sm:$0xff]  }
 0x1d5   :  { %2369 = vmatprep.subr.bf16.mxu0 %v2682_v15 }
 0x1d6   :  { %2388 = vmatpush3.bf16.msra.mxu1 %v2518_v25 }
 0x1d7   :  { %2389 = vmatprep.subr.bf16.mxu1 %v2682_v15 }
 0x1d8   :  { %2370 = vmatpush3.bf16.msra.mxu0 %v2511_v53  ;;  %v2530_v53 = vld [vmem:[%s2952_s9 + $0x38] sm:$0xff]  }
 0x1d9   :  { %2371 = vmatprep.subr.bf16.mxu0 %v2682_v15 }
 0x1da   :  { %2390 = vmatpush3.bf16.msra.mxu1 %v2519_v26 }
 0x1db   :  { %2391 = vmatprep.subr.bf16.mxu1 %v2682_v15 }
 0x1dc   :  { %2372 = vmatpush3.bf16.msra.mxu0 %v2512_v19  ;;  %v2228_v19 = vld [vmem:[%s2951_s8] ss:$0 sm:$0xff]  ;;  %s2641_s8 = scalar_lea.vmem %s2028_s12, 32 }
 0x1dd   :  { %2373 = vmatprep.subr.bf16.mxu0 %v2682_v15  ;;  %p2642_p12 = scmp.ne.s32.totalorder %s2028_s12, %s2641_s8  ;;  %p2647_p0 = scmp.lt.s32.totalorder %s2641_s8, %s2641_s8 }
 0x1de   :  { %2392 = vmatpush3.bf16.msra.mxu1 %v2520_v27 }
 0x1df   :  { %2393 = vmatprep.subr.bf16.mxu1 %v2682_v15  ;;  %p2648_p1 = por %p2647_p0, %p2646_p13 }
 0x1e0   :  { %2374 = vmatpush3.bf16.msra.mxu0 %v2513_v20 }
 0x1e1   :  { %2375 = vmatprep.subr.bf16.mxu0 %v2682_v15  ;;  %p2649_p2 = pnand %p2648_p1, %p2642_p12 }
 0x1e2   :  { %2394 = vmatpush3.bf16.msra.mxu1 %v2521_v1 }
 0x1e3   :  { %2395 = vmatprep.subr.bf16.mxu1 %v2682_v15 }
 0x1e4   :  { %2376 = vmatpush3.bf16.msra.mxu0 %v2514_v21 }
 0x1e5   :  { %2401 = vmatprep.subr.bf16.mxu0 %v2682_v15 }
 0x1e6   :  { %2396 = vmatpush3.bf16.msra.mxu1 %v2522_v2 }
 0x27a   :  { %v2262_v28 = vpop.f32.mrb[8].mxu0  ;;  %v2284_v29 = vpop.f32.mrb[8].mxu1 }
 0x27b   :  { %v2263_v31 = vpop.f32.mrb[9].mxu0  ;;  %v2285_v32 = vpop.f32.mrb[9].mxu1 }
 0x27c   :  { %v2264_v33 = vadd.f32 %v2263_v31, %v2262_v28  ;;  %v2286_v34 = vadd.f32 %v2285_v32, %v2284_v29  ;;  %v2265_v35 = vpop.f32.mrb[10].mxu0  ;;  %v2287_v36 = vpop.f32.mrb[10].mxu1 }
 0x27d   :  { %v2266_v37 = vpop.f32.mrb[11].mxu0  ;;  %v2288_v38 = vpop.f32.mrb[11].mxu1 }
 0x27e   :  { %v1145_v39 = vadd.f32 %v2264_v33, %v2151_v30  ;;  %v1321_v40 = vadd.f32 %v2286_v34, %v2168_v55 }
 0x280   :  { %v1150_v41 = vmax.f32 %v1145_v39, 0.0  ;;  %v1326_v42 = vmax.f32 %v1321_v40, 0.0 }
 0x282   :  { %v1327_v43 = vmax.f32 %v1150_v41, %v1326_v42 }
 0x29a   :  { %v2306_v44 = vpop.f32.mrb[12].mxu0  ;;  %v2328_v46 = vpop.f32.mrb[12].mxu1 }
 0x29b   :  { %v2307_v48 = vpop.f32.mrb[13].mxu0  ;;  %v2329_v50 = vpop.f32.mrb[13].mxu1 }
 0x29c   :  { %v2308_v51 = vadd.f32 %v2307_v48, %v2306_v44  ;;  %v2330_v52 = vadd.f32 %v2329_v50, %v2328_v46  ;;  %v2309_v54 = vpop.f32.mrb[14].mxu0  ;;  %v2331_v56 = vpop.f32.mrb[14].mxu1 }
 0x29d   :  { %v2310_v57 = vpop.f32.mrb[15].mxu0  ;;  %v2332_v58 = vpop.f32.mrb[15].mxu1 }
 0x29e   :  { %v1498_v59 = vadd.f32 %v2308_v51, %v2185_v47  ;;  %v1674_v60 = vadd.f32 %v2330_v52, %v2202_v49 }
 0x2a0   :  { %v1503_v61 = vmax.f32 %v1498_v59, 0.0  ;;  %v1679_v62 = vmax.f32 %v1674_v60, 0.0 }
 0x2a2   :  { %v1680_v63 = vmax.f32 %v1503_v61, %v1679_v62 }
 0x2a4   :  { %v1681_v0 = vmax.f32 %v1327_v43, %v1680_v63 }
 0x2a6   :  { %v1682_v45 = vpack.c.bf16 %v1681_v0, %v1681_v0 }
 0x2a8   :  { %2378 = vmatmul.mubr.bf16.vlgmr.msra.gmra.mrb[16].mxu0 %v1682_v45 }
 0x2a9   :  { %2417 = vmatprep.mubr.msk.bf16.mxu0 %vm2683_vm2, %v2682_v15  ;;  %2402 = vmatpush3.bf16.msra.mxu0 %v2523_v3 }
 0x2aa   :  { %2403 = vmatprep.subr.bf16.mxu0 %v2682_v15 }
 0x2ad   :  { %2404 = vmatpush3.bf16.msra.mxu0 %v2524_v4 }
 0x2ae   :  { %2405 = vmatprep.subr.bf16.mxu0 %v2682_v15 }
 0x2b1   :  { %2406 = vmatpush3.bf16.msra.mxu0 %v2525_v5 }
 0x2b2   :  { %2407 = vmatprep.subr.bf16.mxu0 %v2682_v15 }
 0x2b5   :  { %2408 = vmatpush3.bf16.msra.mxu0 %v2526_v6 }
 0x2b6   :  { %2409 = vmatprep.subr.bf16.mxu0 %v2682_v15 }
 0x2b9   :  { %2410 = vmatpush3.bf16.msra.mxu0 %v2527_v7 }
 0x2ba   :  { %2411 = vmatprep.subr.bf16.mxu0 %v2682_v15 }
 0x2bd   :  { %2412 = vmatpush3.bf16.msra.mxu0 %v2528_v8 }
 0x2be   :  { %2413 = vmatprep.subr.bf16.mxu0 %v2682_v15 }
 0x2c1   :  { %2414 = vmatpush3.bf16.msra.mxu0 %v2529_v18 }
 0x2c2   :  { %2415 = vmatprep.subr.bf16.mxu0 %v2682_v15  ;;  %v2237_v15 = vld [vmem:[%s2953_s10] ss:$0 sm:$0xff] }
 0x2c5   :  { %2416 = vmatpush3.bf16.msra.mxu0 %v2530_v53 }
 0x37b   :  { %v1788_v10 = vpop.f32.mrb[16].mxu0 }
 0x37c   :  { %v1789_v11 = vadd.f32 %v2219_v9, %v1788_v10  ;;  %v2379_v12 = vpop.f32.mrb[17].mxu0 }
 0x37d   :  { %v1791_v13 = vpop.f32.mrb[18].mxu0 }
 0x37e   :  { %v1794_v14 = vmax.f32 %v1789_v11, 0.0  ;;  %v2380_v16 = vpop.f32.mrb[19].mxu0 }
 0x380   :  { %v1795_v17 = vpack.c.bf16 %v1794_v14, %v1794_v14 }
 0x382   :  { %2398 = vmatmul.mubr.bf16.vlgmr.msra.gmra.mrb[16].mxu1 %v1795_v17 }
 0x455   :  { %v1901_v20 = vpop.f32.mrb[16].mxu1 }
 0x456   :  { %v1902_v21 = vadd.f32 %v2228_v19, %v1901_v20  ;;  %v2399_v22 = vpop.f32.mrb[17].mxu1 }
 0x457   :  { %v1904_v23 = vpop.f32.mrb[18].mxu1 }
 0x458   :  { %v1907_v24 = vmax.f32 %v1902_v21, 0.0  ;;  %v2400_v25 = vpop.f32.mrb[19].mxu1 }
 0x45a   :  { %v1908_v26 = vpack.c.bf16 %v1907_v24, %v1907_v24 }
 0x45c   :  { %2418 = vmatmul.mubr.bf16.vlgmr.msra.gmra.mrb[20].mxu0 %v1908_v26 }
 0x52f   :  { %v2014_v27 = vpop.f32.mrb[20].mxu0 }
 0x530   :  { %v2015_v28 = vadd.f32 %v2237_v15, %v2014_v27  ;;  %v2419_v29 = vpop.f32.mrb[21].mxu0 }
 0x531   :  { %v2017_v30 = vpop.f32.mrb[22].mxu0 }
 0x532   :  { %2020 = vst [vmem:[#allocation11] sm:$0x3] %v2015_v28  ;;  %v2420_v31 = vpop.f32.mrb[23].mxu0 }
 0x533   :  { %2652 = shalt.err (!%p2649_p2)
}
 0x534   :  { %s2653_s10 = scalar_lea.hbm %s2954_s11, 32 }
 0x535   :  { %p2654_p3 = scmp.ne.s32.totalorder %s2954_s11, %s2653_s10  ;;  %p2657_p4 = scmp.lt.u32.totalorder %s2653_s10, %s2954_s11 }
 0x537   :  { %p2659_p5 = pnand %p2657_p4, %p2654_p3 }
 0x539   :  { %2662 = shalt.err (!%p2659_p5)
}
 0x53a   :  { %2030 = dma.vmem_to_hbm [thread:$0]  %s2028_s12, 32, %s2954_s11, [#allocation4]  }
 0x53b   :  { %2669 = dma.done.wait [#allocation4], 32  }
 0x53c   :  { %2670 = vsyncadd [#allocation4], 4294967264 }
 0x53d   :  { %2034 = vsyncpa [#allocation3], 1 }
 0x53e   :  { %2035 = vsyncpa [#allocation6], 1 }
 0x53f   :  { %2036 = vsyncpa [#allocation9], 1 }
 0x540   :  { %2037 = vsyncpa [#allocation4], 1 }

</bundles_post_ra>
